<compile_context>
chip_gen: v7x
topology: tpu7x:2x2x1
jax: 0.10.0
libtpu: 0.0.40
codegen_flags: <defaults>
</compile_context>

<pallas_src>
import functools
import math

import jax
import jax.numpy as jnp
from jax import lax
from jax.experimental import pallas as pl
from jax.experimental.pallas import tpu as pltpu

_EPS = 1e-5                    # nn.LayerNorm default
MATMUL_DTYPE = jnp.bfloat16    # native MXU dtype on v5e / v6e / v7x


def _mm(x, w):
    return jnp.dot(x.astype(MATMUL_DTYPE), w.astype(MATMUL_DTYPE),
                   preferred_element_type=jnp.float32)


def _layernorm(x, g, b):
    x = x.astype(jnp.float32)
    mu = jnp.mean(x, axis=-1, keepdims=True)
    var = jnp.mean((x - mu) ** 2, axis=-1, keepdims=True)
    return (x - mu) * lax.rsqrt(var + _EPS) * g + b


def _full_spec(shape):
    nd = len(shape)
    return pl.BlockSpec(shape, lambda *idx, _nd=nd: (0,) * _nd)


def _compiler_params(semantics, est_bytes):
    # Derive the scoped VMEM limit from the actual buffer budget (double
    # buffering already folded into est_bytes) + headroom; clamp to a range
    # that is safe on every generation (v7x has 64 MiB per TC).
    limit = int(min(64 << 20, max(32 << 20, int(est_bytes) + (4 << 20))))
    return pltpu.CompilerParams(dimension_semantics=semantics,
                                vmem_limit_bytes=limit)


def _nbytes(x):
    return x.size * x.dtype.itemsize


def _pick_row_tile(total, cands=(1024, 512, 256, 128, 64, 32, 16, 8)):
    for c in cands:
        if total % c == 0:
            return c
    return total


def _pick_time_tile(total, row_bytes, budget=2 << 20):
    cap = max(1, budget // max(int(row_bytes), 1))
    best = 1
    for c in range(1, total + 1):
        if total % c == 0 and c <= cap:
            best = c
    return best


# ---------------------------------------------------------------------------
# Kernel 1: row-parallel MLP + hoisted LSTM input projection.
#   rows = flattened (T*B) timepoints; per row:
#   ReLU(LN(x@W1+b1)); ReLU(LN(.@W2+b2)); gates = .@W_ih + (b_ih + b_hh)
#   Gate columns are pre-permuted to [i | f | o | g].
# ---------------------------------------------------------------------------
def mlp_gates_kernel(x_ref,
                     mw1, mb1, mg1, mbe1, mw2, mb2, mg2, mbe2,
                     wih, lb,
                     gx_ref):
    x = x_ref[...]
    h = jnp.maximum(_layernorm(_mm(x, mw1[...]) + mb1[...], mg1[...], mbe1[...]), 0.0)
    h = jnp.maximum(_layernorm(_mm(h, mw2[...]) + mb2[...], mg2[...], mbe2[...]), 0.0)
    gx_ref[...] = _mm(h, wih[...]) + lb[...]


MLP_KEYS = ['mlp_w1', 'mlp_b1', 'mlp_g1', 'mlp_be1',
            'mlp_w2', 'mlp_b2', 'mlp_g2', 'mlp_be2',
            'lstm_wih', 'lstm_b']


def run_mlp_gates(x_rows, params):
    R, N = x_rows.shape
    H = params['mlp_w2'].shape[1]
    plist = [params[k] for k in MLP_KEYS]
    rm = _pick_row_tile(R)
    grid = (R // rm,)

    in_specs = [pl.BlockSpec((rm, N), lambda i: (i, 0))]
    in_specs += [_full_spec(p.shape) for p in plist]

    est = (2 * (rm * N * 4 + rm * 4 * H * 4)           # double-buffered I/O blocks
           + 2 * sum(_nbytes(p) for p in plist))        # weights
    return pl.pallas_call(
        mlp_gates_kernel,
        out_shape=jax.ShapeDtypeStruct((R, 4 * H), jnp.float32),
        grid=grid,
        in_specs=in_specs,
        out_specs=pl.BlockSpec((rm, 4 * H), lambda i: (i, 0)),
        compiler_params=_compiler_params(("parallel",), est),
    )(x_rows, *plist)


# ---------------------------------------------------------------------------
# Kernel 2: LSTM recurrence over time with the FULL batch as MXU rows.
#   gx: (T, B, 4H) time-major hoisted gates.  Grid streams T in tiles
#   ("arbitrary" -> sequential); h/c persist in VMEM scratch across grid steps
#   and live in vreg carries inside the unrolled fori_loop.
# ---------------------------------------------------------------------------
def lstm_kernel(gx_ref, whh_ref, hseq_ref, h_scr, c_scr, *, unroll):
    H = h_scr.shape[1]

    @pl.when(pl.program_id(0) == 0)
    def _():
        h_scr[...] = jnp.zeros_like(h_scr)
        c_scr[...] = jnp.zeros_like(c_scr)

    whh = whh_ref[...]                                   # (H, 4H) bf16, VMEM-resident

    def step(tj, carry):
        h, c = carry
        gates = gx_ref[tj] + jnp.dot(h.astype(MATMUL_DTYPE), whh,
                                     preferred_element_type=jnp.float32)
        ifo = jax.nn.sigmoid(gates[:, :3 * H])           # one contiguous sigmoid (i,f,o)
        g = jnp.tanh(gates[:, 3 * H:])
        c_new = ifo[:, H:2 * H] * c + ifo[:, :H] * g
        h_new = ifo[:, 2 * H:] * jnp.tanh(c_new)
        hseq_ref[tj] = h_new                             # full (B, H) sublane store
        return (h_new, c_new)

    h_fin, c_fin = lax.fori_loop(0, gx_ref.shape[0], step,
                                 (h_scr[...], c_scr[...]), unroll=unroll)
    h_scr[...] = h_fin
    c_scr[...] = c_fin


def run_lstm(gx_tb, whh, H):
    T, B, G = gx_tb.shape                                # G = 4H
    tt = _pick_time_tile(T, B * G * 4)
    grid = (T // tt,)
    unroll = next(u for u in (8, 4, 2, 1) if tt % u == 0)

    est = (2 * (tt * B * G * 4 + tt * B * H * 4)
           + 2 * _nbytes(whh) + 2 * B * H * 4)
    return pl.pallas_call(
        functools.partial(lstm_kernel, unroll=unroll),
        out_shape=jax.ShapeDtypeStruct((T, B, H), jnp.float32),
        grid=grid,
        in_specs=[pl.BlockSpec((tt, B, G), lambda i: (i, 0, 0)),
                  _full_spec(whh.shape)],
        out_specs=pl.BlockSpec((tt, B, H), lambda i: (i, 0, 0)),
        scratch_shapes=[pltpu.VMEM((B, H), jnp.float32),
                        pltpu.VMEM((B, H), jnp.float32)],
        compiler_params=_compiler_params(("arbitrary",), est),
    )(gx_tb, whh)


# ---------------------------------------------------------------------------
# Kernel 3: ModuleTransformer block (single-head MHA + LN + MLP + residual + LN)
#   per batch element over the T sequence.  Grid = (B,) "parallel".
# ---------------------------------------------------------------------------
def tatt_kernel(x_ref,
                wqkv, bqkv, wo, bo, tg1, tbe1,
                tw1, tb1, tw2, tb2, tg2, tbe2,
                out_ref):
    H = x_ref.shape[2]
    xs = x_ref[0]                                        # (T, H)
    qkv = _mm(xs, wqkv[...]) + bqkv[...]                 # fused QKV: (T, 3H)
    q = qkv[:, :H]
    k = qkv[:, H:2 * H]
    v = qkv[:, 2 * H:]
    # contract last dims directly (no explicit k.T relayout)
    s = lax.dot_general(q.astype(MATMUL_DTYPE), k.astype(MATMUL_DTYPE),
                        dimension_numbers=(((1,), (1,)), ((), ())),
                        preferred_element_type=jnp.float32) * (1.0 / math.sqrt(H))
    s = s - jnp.max(s, axis=-1, keepdims=True)
    p = jnp.exp(s)
    p = p * pl.reciprocal(jnp.sum(p, axis=-1, keepdims=True), approx=True)
    ctx = _mm(p, v)
    a_out = _mm(ctx, wo[...]) + bo[...]
    # dropout1/dropout2 identity.  NOTE: PyTorch ModuleTransformer applies
    # layer_norm1 to the attention output alone (no residual from q) -- kept.
    y = _layernorm(a_out, tg1[...], tbe1[...])
    m = jnp.maximum(_mm(y, tw1[...]) + tb1[...], 0.0)
    m = _mm(m, tw2[...]) + tb2[...]
    out_ref[0] = _layernorm(y + m, tg2[...], tbe2[...])


TATT_KEYS = ['t_wqkv', 't_bqkv', 't_wo', 't_bo', 't_g1', 't_be1',
             't_w1', 't_b1', 't_w2', 't_b2', 't_g2', 't_be2']


def run_tatt(x_bth, params):
    B, T, H = x_bth.shape
    plist = [params[k] for k in TATT_KEYS]
    in_specs = [pl.BlockSpec((1, T, H), lambda b: (b, 0, 0))]
    in_specs += [_full_spec(p.shape) for p in plist]

    est = (2 * (2 * T * H * 4) + 2 * sum(_nbytes(p) for p in plist)
           + 2 * T * T * 4 + 4 * T * H * 4)              # scores + qkv/ctx temporaries
    return pl.pallas_call(
        tatt_kernel,
        out_shape=jax.ShapeDtypeStruct((B, T, H), jnp.float32),
        grid=(B,),
        in_specs=in_specs,
        out_specs=pl.BlockSpec((1, T, H), lambda b: (b, 0, 0)),
        compiler_params=_compiler_params(("parallel",), est),
    )(x_bth, *plist)


# ---------------------------------------------------------------------------
# Kernel 4: SE head on the flattened connectivity matrix.
#   Linear(N*N, H) -> LN -> ReLU -> Linear(H, H) -> LN -> ReLU
# K dimension (= N*N) is streamed in bf16 tiles with an f32 VMEM accumulator
# (output block constant across the "arbitrary" K axis -> stays VMEM-resident;
# written only under pl.when(last) -- keep a regression test if out_spec ever
# changes).
# ---------------------------------------------------------------------------
def se_kernel(a_ref, w1_ref, b1_ref, g1_ref, be1_ref,
              w2_ref, b2_ref, g2_ref, be2_ref, o_ref, acc_ref):
    kstep = pl.program_id(0)

    @pl.when(kstep == 0)
    def _():
        acc_ref[...] = jnp.zeros_like(acc_ref)

    acc_ref[...] += _mm(a_ref[...], w1_ref[...])

    @pl.when(kstep == pl.num_programs(0) - 1)
    def _():
        h = jnp.maximum(
            _layernorm(acc_ref[...] + b1_ref[...], g1_ref[...], be1_ref[...]), 0.0)
        h = _mm(h, w2_ref[...]) + b2_ref[...]
        o_ref[...] = jnp.maximum(_layernorm(h, g2_ref[...], be2_ref[...]), 0.0)


def run_se(a_flat, w1, b1, g1, be1, w2, b2, g2, be2, block_k=None):
    B, K = a_flat.shape
    H = w2.shape[1]
    if block_k is None:
        block_k = K
        for cand in (4096, 2048, 1024, 512, 256, 128):   # bigger K tiles -> roofline
            if K % cand == 0:
                block_k = cand
                break
    assert K % block_k == 0, (K, block_k)
    nk = K // block_k

    est = (2 * (B * block_k * a_flat.dtype.itemsize + block_k * H * w1.dtype.itemsize)
           + B * H * 4
           + 2 * (_nbytes(b1) + _nbytes(g1) + _nbytes(be1) + _nbytes(w2)
                  + _nbytes(b2) + _nbytes(g2) + _nbytes(be2)))
    return pl.pallas_call(
        se_kernel,
        out_shape=jax.ShapeDtypeStruct((B, H), jnp.float32),
        grid=(nk,),
        in_specs=[pl.BlockSpec((B, block_k), lambda kk: (0, kk)),
                  pl.BlockSpec((block_k, H), lambda kk: (kk, 0)),
                  _full_spec(b1.shape), _full_spec(g1.shape), _full_spec(be1.shape),
                  _full_spec(w2.shape), _full_spec(b2.shape),
                  _full_spec(g2.shape), _full_spec(be2.shape)],
        out_specs=pl.BlockSpec((B, H), lambda kk: (0, 0)),
        scratch_shapes=[pltpu.VMEM((B, H), jnp.float32)],
        compiler_params=_compiler_params(("arbitrary",), est),
    )(a_flat, w1, b1, g1, be1, w2, b2, g2, be2)


# ---------------------------------------------------------------------------
# BrainEncoder forward.
# ---------------------------------------------------------------------------
def brain_encoder(t, a, params, se_block_k=None):
    T, B, N = t.shape
    H = params['mlp_w2'].shape[1]

    # MLP is row-wise, so the time-major flatten '(t b) c' is equivalent to
    # PyTorch's '(b t) c' per row; this reshape is free (no transpose).
    gx = run_mlp_gates(t.reshape(T * B, N), params)          # (T*B, 4H)
    hseq = run_lstm(gx.reshape(T, B, 4 * H),
                    params['lstm_whh'], H)                    # (T, B, H)

    # per-batch attention kernel consumes batch-major; only these small (T,B,H)
    # relayouts remain in XLA.
    y_bth = run_tatt(jnp.transpose(hseq, (1, 0, 2)), params)  # (B, T, H)
    x_enc = jnp.transpose(y_bth, (1, 0, 2))                   # (T, B, H)

    e_s = run_se(a.reshape(B, N * N),
                 params['se_w1'], params['se_b1'], params['se_g1'], params['se_be1'],
                 params['se_w2'], params['se_b2'], params['se_g2'], params['se_be2'],
                 block_k=se_block_k)
    return x_enc, e_s


# ---------------------------------------------------------------------------
# Deterministic synthetic parameters (shapes from __init__), kernel-ready
# layout.  Matmul weights stored in bf16 (MXU operands); biases/LN params f32.
# ---------------------------------------------------------------------------
def init_params(key, N, H):
    def wmat(k, shape):   # matmul weight -> bf16 in HBM
        return (jax.random.normal(k, shape, jnp.float32) * 0.1).astype(MATMUL_DTYPE)

    def vmat(k, shape):   # bias / additive vector -> f32
        return jax.random.normal(k, shape, jnp.float32) * 0.1

    keys = iter(jax.random.split(key, 32))
    ones = lambda d: jnp.ones((1, d), jnp.float32)
    zeros = lambda d: jnp.zeros((1, d), jnp.float32)
    p = {}
    # self.MLP: Linear(N,H) LN(H) ReLU Linear(H,H) LN(H) ReLU
    p['mlp_w1'] = wmat(next(keys), (N, H)); p['mlp_b1'] = vmat(next(keys), (1, H))
    p['mlp_g1'] = ones(H);                  p['mlp_be1'] = zeros(H)
    p['mlp_w2'] = wmat(next(keys), (H, H)); p['mlp_b2'] = vmat(next(keys), (1, H))
    p['mlp_g2'] = ones(H);                  p['mlp_be2'] = zeros(H)
    # self.PE: LSTM(H,H,1).  Pre-transposed (H,4H), bias = b_ih + b_hh,
    # gate columns permuted from PyTorch (i,f,g,o) to (i,f,o,g).
    p['lstm_wih'] = wmat(next(keys), (H, 4 * H))
    p['lstm_whh'] = wmat(next(keys), (H, 4 * H))
    p['lstm_b'] = vmat(next(keys), (1, 4 * H))
    # self.tatt: ModuleTransformer(H, 2H, num_heads=1).  QKV fused: cols [q|k|v].
    p['t_wqkv'] = wmat(next(keys), (H, 3 * H)); p['t_bqkv'] = vmat(next(keys), (1, 3 * H))
    p['t_wo'] = wmat(next(keys), (H, H));       p['t_bo'] = vmat(next(keys), (1, H))
    p['t_g1'] = ones(H);                        p['t_be1'] = zeros(H)
    p['t_w1'] = wmat(next(keys), (H, 2 * H));   p['t_b1'] = vmat(next(keys), (1, 2 * H))
    p['t_w2'] = wmat(next(keys), (2 * H, H));   p['t_b2'] = vmat(next(keys), (1, H))
    p['t_g2'] = ones(H);                        p['t_be2'] = zeros(H)
    # self.SE: Linear(N*N,H) LN(H) ReLU Linear(H,H) LN(H) ReLU
    p['se_w1'] = wmat(next(keys), (N * N, H)); p['se_b1'] = vmat(next(keys), (1, H))
    p['se_g1'] = ones(H);                      p['se_be1'] = zeros(H)
    p['se_w2'] = wmat(next(keys), (H, H));     p['se_b2'] = vmat(next(keys), (1, H))
    p['se_g2'] = ones(H);                      p['se_be2'] = zeros(H)
    return p


if __name__ == "__main__":
    T, B, N, H = 8, 2, 16, 32
    key = jax.random.PRNGKey(0)
    k_t, k_a, k_p = jax.random.split(key, 3)
    t = jax.random.normal(k_t, (T, B, N), jnp.float32)
    a = jax.random.normal(k_a, (B, N, N), jnp.float32)
    params = init_params(k_p, N, H)

    # se_block_k=128 exercises the K-tiled accumulator path (N*N = 256 -> 2 steps).
    fwd = jax.jit(lambda tt, aa: brain_encoder(tt, aa, params, se_block_k=128))
    x_enc, e_s = fwd(t, a)
    jax.block_until_ready((x_enc, e_s))
    assert x_enc.shape == (T, B, H), x_enc.shape
    assert e_s.shape == (B, H), e_s.shape
    assert jnp.all(jnp.isfinite(x_enc)) and jnp.all(jnp.isfinite(e_s))
    print("KERNEL_OK")
</pallas_src>

<mosaic_0001>
module attributes {stable_mosaic.version = 11 : i64} {
  func.func @lstm_kernel(%arg0: i32, %arg1: memref<8x2x128xf32, #tpu.memory_space<vmem>>, %arg2: memref<32x128xbf16, #tpu.memory_space<vmem>>, %arg3: memref<8x2x32xf32, #tpu.memory_space<vmem>>, %arg4: memref<2x32xf32, #tpu.memory_space<vmem>>, %arg5: memref<2x32xf32, #tpu.memory_space<vmem>>) attributes {dimension_semantics = [#tpu.dimension_semantics<arbitrary>], iteration_bounds = array<i64: 1>, scalar_prefetch = 0 : i64, scratch_operands = 2 : i64, tpu.core_type = #tpu.core_type<tc>, window_params = [{transform_indices = @transform_0, window_bounds = array<i64: 8, 2, 128>}, {pipeline_mode = #tpu.pipeline_mode<synchronous>, transform_indices = @transform_1, window_bounds = array<i64: 32, 128>}, {transform_indices = @transform_2, window_bounds = array<i64: 8, 2, 32>}]} {
    %c0_i32 = arith.constant 0 : i32
    %0 = arith.cmpi eq, %arg0, %c0_i32 : i32
    %1 = arith.extui %0 : i1 to i32
    %c0_i32_0 = arith.constant 0 : i32
    %2 = arith.cmpi ne, %1, %c0_i32_0 : i32
    scf.if %2 {
      %cst_58 = arith.constant 0.000000e+00 : f32
      %216 = vector.broadcast %cst_58 : f32 to vector<2x32xf32>
      %c0_59 = arith.constant 0 : index
      %c0_60 = arith.constant 0 : index
      %217 = vector.load %arg4[%c0_59, %c0_60] : memref<2x32xf32, #tpu.memory_space<vmem>>, vector<2x32xf32>
      tpu.vector_store %arg4[%c0_59, %c0_60], %216 {strides = array<i32>} : memref<2x32xf32, #tpu.memory_space<vmem>>, vector<2x32xf32>,
      %cst_61 = arith.constant 0.000000e+00 : f32
      %218 = vector.broadcast %cst_61 : f32 to vector<2x32xf32>
      %c0_62 = arith.constant 0 : index
      %c0_63 = arith.constant 0 : index
      %219 = vector.load %arg5[%c0_62, %c0_63] : memref<2x32xf32, #tpu.memory_space<vmem>>, vector<2x32xf32>
      tpu.vector_store %arg5[%c0_62, %c0_63], %218 {strides = array<i32>} : memref<2x32xf32, #tpu.memory_space<vmem>>, vector<2x32xf32>,
    } else {
    }
    %c0 = arith.constant 0 : index
    %c0_1 = arith.constant 0 : index
    %3 = vector.load %arg2[%c0, %c0_1] : memref<32x128xbf16, #tpu.memory_space<vmem>>, vector<32x128xbf16>
    %c0_2 = arith.constant 0 : index
    %c0_3 = arith.constant 0 : index
    %4 = vector.load %arg4[%c0_2, %c0_3] : memref<2x32xf32, #tpu.memory_space<vmem>>, vector<2x32xf32>
    %c0_4 = arith.constant 0 : index
    %c0_5 = arith.constant 0 : index
    %5 = vector.load %arg5[%c0_4, %c0_5] : memref<2x32xf32, #tpu.memory_space<vmem>>, vector<2x32xf32>
    %c0_i32_6 = arith.constant 0 : i32
    %6 = arith.index_cast %c0_i32_6 : i32 to index
    %c0_7 = arith.constant 0 : index
    %c0_8 = arith.constant 0 : index
    %7 = vector.load %arg1[%6, %c0_7, %c0_8] : memref<8x2x128xf32, #tpu.memory_space<vmem>>, vector<1x2x128xf32>
    %8 = vector.shape_cast %7 : vector<1x2x128xf32> to vector<2x128xf32>
    %9 = arith.truncf %4 : vector<2x32xf32> to vector<2x32xbf16>
    %cst = arith.constant dense<0.000000e+00> : vector<2x128xf32>
    %10 = tpu.matmul %9, %3, %cst {dimension_numbers = #tpu.dot_dimension_numbers<[1], [0], [0], [1], [0, 0, 1, 1], [], []>} : vector<2x32xbf16>, vector<32x128xbf16>, vector<2x128xf32> -> vector<2x128xf32>
    %11 = arith.addf %8, %10 : vector<2x128xf32>
    %12 = vector.extract_strided_slice %11 {offsets = [0, 0], sizes = [2, 96], strides = [1, 1]} : vector<2x128xf32> to vector<2x96xf32>
    %13 = arith.negf %12 : vector<2x96xf32>
    %14 = math.exp %13 : vector<2x96xf32>
    %cst_9 = arith.constant 1.000000e+00 : f32
    %15 = vector.broadcast %cst_9 : f32 to vector<2x96xf32>
    %16 = arith.addf %15, %14 : vector<2x96xf32>
    %17 = arith.divf %15, %16 : vector<2x96xf32>
    %18 = vector.extract_strided_slice %11 {offsets = [0, 96], sizes = [2, 32], strides = [1, 1]} : vector<2x128xf32> to vector<2x32xf32>
    %19 = math.tanh %18 : vector<2x32xf32>
    %20 = vector.extract_strided_slice %17 {offsets = [0, 32], sizes = [2, 32], strides = [1, 1]} : vector<2x96xf32> to vector<2x32xf32>
    %21 = arith.mulf %20, %5 : vector<2x32xf32>
    %22 = vector.extract_strided_slice %17 {offsets = [0, 0], sizes = [2, 32], strides = [1, 1]} : vector<2x96xf32> to vector<2x32xf32>
    %23 = arith.mulf %22, %19 : vector<2x32xf32>
    %24 = arith.addf %21, %23 : vector<2x32xf32>
    %25 = vector.extract_strided_slice %17 {offsets = [0, 64], sizes = [2, 32], strides = [1, 1]} : vector<2x96xf32> to vector<2x32xf32>
    %26 = math.tanh %24 : vector<2x32xf32>
    %27 = arith.mulf %25, %26 : vector<2x32xf32>
    %28 = arith.index_cast %c0_i32_6 : i32 to index
    %c0_10 = arith.constant 0 : index
    %c0_11 = arith.constant 0 : index
    %29 = vector.load %arg3[%28, %c0_10, %c0_11] : memref<8x2x32xf32, #tpu.memory_space<vmem>>, vector<1x2x32xf32>
    %30 = vector.shape_cast %29 : vector<1x2x32xf32> to vector<2x32xf32>
    %31 = vector.shape_cast %27 : vector<2x32xf32> to vector<1x2x32xf32>
    tpu.vector_store %arg3[%28, %c0_10, %c0_11], %31 {strides = array<i32>} : memref<8x2x32xf32, #tpu.memory_space<vmem>>, vector<1x2x32xf32>,
    %c1_i32 = arith.constant 1 : i32
    %32 = arith.index_cast %c1_i32 : i32 to index
    %c0_12 = arith.constant 0 : index
    %c0_13 = arith.constant 0 : index
    %33 = vector.load %arg1[%32, %c0_12, %c0_13] : memref<8x2x128xf32, #tpu.memory_space<vmem>>, vector<1x2x128xf32>
    %34 = vector.shape_cast %33 : vector<1x2x128xf32> to vector<2x128xf32>
    %35 = arith.truncf %27 : vector<2x32xf32> to vector<2x32xbf16>
    %cst_14 = arith.constant dense<0.000000e+00> : vector<2x128xf32>
    %36 = tpu.matmul %35, %3, %cst_14 {dimension_numbers = #tpu.dot_dimension_numbers<[1], [0], [0], [1], [0, 0, 1, 1], [], []>} : vector<2x32xbf16>, vector<32x128xbf16>, vector<2x128xf32> -> vector<2x128xf32>
    %37 = arith.addf %34, %36 : vector<2x128xf32>
    %38 = vector.extract_strided_slice %37 {offsets = [0, 0], sizes = [2, 96], strides = [1, 1]} : vector<2x128xf32> to vector<2x96xf32>
    %39 = arith.negf %38 : vector<2x96xf32>
    %40 = math.exp %39 : vector<2x96xf32>
    %cst_15 = arith.constant 1.000000e+00 : f32
    %41 = vector.broadcast %cst_15 : f32 to vector<2x96xf32>
    %42 = arith.addf %41, %40 : vector<2x96xf32>
    %43 = arith.divf %41, %42 : vector<2x96xf32>
    %44 = vector.extract_strided_slice %37 {offsets = [0, 96], sizes = [2, 32], strides = [1, 1]} : vector<2x128xf32> to vector<2x32xf32>
    %45 = math.tanh %44 : vector<2x32xf32>
    %46 = vector.extract_strided_slice %43 {offsets = [0, 32], sizes = [2, 32], strides = [1, 1]} : vector<2x96xf32> to vector<2x32xf32>
    %47 = arith.mulf %46, %24 : vector<2x32xf32>
    %48 = vector.extract_strided_slice %43 {offsets = [0, 0], sizes = [2, 32], strides = [1, 1]} : vector<2x96xf32> to vector<2x32xf32>
    %49 = arith.mulf %48, %45 : vector<2x32xf32>
    %50 = arith.addf %47, %49 : vector<2x32xf32>
    %51 = vector.extract_strided_slice %43 {offsets = [0, 64], sizes = [2, 32], strides = [1, 1]} : vector<2x96xf32> to vector<2x32xf32>
    %52 = math.tanh %50 : vector<2x32xf32>
    %53 = arith.mulf %51, %52 : vector<2x32xf32>
    %54 = arith.index_cast %c1_i32 : i32 to index
    %c0_16 = arith.constant 0 : index
    %c0_17 = arith.constant 0 : index
    %55 = vector.load %arg3[%54, %c0_16, %c0_17] : memref<8x2x32xf32, #tpu.memory_space<vmem>>, vector<1x2x32xf32>
    %56 = vector.shape_cast %55 : vector<1x2x32xf32> to vector<2x32xf32>
    %57 = vector.shape_cast %53 : vector<2x32xf32> to vector<1x2x32xf32>
    tpu.vector_store %arg3[%54, %c0_16, %c0_17], %57 {strides = array<i32>} : memref<8x2x32xf32, #tpu.memory_space<vmem>>, vector<1x2x32xf32>,
    %c2_i32 = arith.constant 2 : i32
    %58 = arith.index_cast %c2_i32 : i32 to index
    %c0_18 = arith.constant 0 : index
    %c0_19 = arith.constant 0 : index
    %59 = vector.load %arg1[%58, %c0_18, %c0_19] : memref<8x2x128xf32, #tpu.memory_space<vmem>>, vector<1x2x128xf32>
    %60 = vector.shape_cast %59 : vector<1x2x128xf32> to vector<2x128xf32>
    %61 = arith.truncf %53 : vector<2x32xf32> to vector<2x32xbf16>
    %cst_20 = arith.constant dense<0.000000e+00> : vector<2x128xf32>
    %62 = tpu.matmul %61, %3, %cst_20 {dimension_numbers = #tpu.dot_dimension_numbers<[1], [0], [0], [1], [0, 0, 1, 1], [], []>} : vector<2x32xbf16>, vector<32x128xbf16>, vector<2x128xf32> -> vector<2x128xf32>
    %63 = arith.addf %60, %62 : vector<2x128xf32>
    %64 = vector.extract_strided_slice %63 {offsets = [0, 0], sizes = [2, 96], strides = [1, 1]} : vector<2x128xf32> to vector<2x96xf32>
    %65 = arith.negf %64 : vector<2x96xf32>
    %66 = math.exp %65 : vector<2x96xf32>
    %cst_21 = arith.constant 1.000000e+00 : f32
    %67 = vector.broadcast %cst_21 : f32 to vector<2x96xf32>
    %68 = arith.addf %67, %66 : vector<2x96xf32>
    %69 = arith.divf %67, %68 : vector<2x96xf32>
    %70 = vector.extract_strided_slice %63 {offsets = [0, 96], sizes = [2, 32], strides = [1, 1]} : vector<2x128xf32> to vector<2x32xf32>
    %71 = math.tanh %70 : vector<2x32xf32>
    %72 = vector.extract_strided_slice %69 {offsets = [0, 32], sizes = [2, 32], strides = [1, 1]} : vector<2x96xf32> to vector<2x32xf32>
    %73 = arith.mulf %72, %50 : vector<2x32xf32>
    %74 = vector.extract_strided_slice %69 {offsets = [0, 0], sizes = [2, 32], strides = [1, 1]} : vector<2x96xf32> to vector<2x32xf32>
    %75 = arith.mulf %74, %71 : vector<2x32xf32>
    %76 = arith.addf %73, %75 : vector<2x32xf32>
    %77 = vector.extract_strided_slice %69 {offsets = [0, 64], sizes = [2, 32], strides = [1, 1]} : vector<2x96xf32> to vector<2x32xf32>
    %78 = math.tanh %76 : vector<2x32xf32>
    %79 = arith.mulf %77, %78 : vector<2x32xf32>
    %80 = arith.index_cast %c2_i32 : i32 to index
    %c0_22 = arith.constant 0 : index
    %c0_23 = arith.constant 0 : index
    %81 = vector.load %arg3[%80, %c0_22, %c0_23] : memref<8x2x32xf32, #tpu.memory_space<vmem>>, vector<1x2x32xf32>
    %82 = vector.shape_cast %81 : vector<1x2x32xf32> to vector<2x32xf32>
    %83 = vector.shape_cast %79 : vector<2x32xf32> to vector<1x2x32xf32>
    tpu.vector_store %arg3[%80, %c0_22, %c0_23], %83 {strides = array<i32>} : memref<8x2x32xf32, #tpu.memory_space<vmem>>, vector<1x2x32xf32>,
    %c3_i32 = arith.constant 3 : i32
    %84 = arith.index_cast %c3_i32 : i32 to index
    %c0_24 = arith.constant 0 : index
    %c0_25 = arith.constant 0 : index
    %85 = vector.load %arg1[%84, %c0_24, %c0_25] : memref<8x2x128xf32, #tpu.memory_space<vmem>>, vector<1x2x128xf32>
    %86 = vector.shape_cast %85 : vector<1x2x128xf32> to vector<2x128xf32>
    %87 = arith.truncf %79 : vector<2x32xf32> to vector<2x32xbf16>
    %cst_26 = arith.constant dense<0.000000e+00> : vector<2x128xf32>
    %88 = tpu.matmul %87, %3, %cst_26 {dimension_numbers = #tpu.dot_dimension_numbers<[1], [0], [0], [1], [0, 0, 1, 1], [], []>} : vector<2x32xbf16>, vector<32x128xbf16>, vector<2x128xf32> -> vector<2x128xf32>
    %89 = arith.addf %86, %88 : vector<2x128xf32>
    %90 = vector.extract_strided_slice %89 {offsets = [0, 0], sizes = [2, 96], strides = [1, 1]} : vector<2x128xf32> to vector<2x96xf32>
    %91 = arith.negf %90 : vector<2x96xf32>
    %92 = math.exp %91 : vector<2x96xf32>
    %cst_27 = arith.constant 1.000000e+00 : f32
    %93 = vector.broadcast %cst_27 : f32 to vector<2x96xf32>
    %94 = arith.addf %93, %92 : vector<2x96xf32>
    %95 = arith.divf %93, %94 : vector<2x96xf32>
    %96 = vector.extract_strided_slice %89 {offsets = [0, 96], sizes = [2, 32], strides = [1, 1]} : vector<2x128xf32> to vector<2x32xf32>
    %97 = math.tanh %96 : vector<2x32xf32>
    %98 = vector.extract_strided_slice %95 {offsets = [0, 32], sizes = [2, 32], strides = [1, 1]} : vector<2x96xf32> to vector<2x32xf32>
    %99 = arith.mulf %98, %76 : vector<2x32xf32>
    %100 = vector.extract_strided_slice %95 {offsets = [0, 0], sizes = [2, 32], strides = [1, 1]} : vector<2x96xf32> to vector<2x32xf32>
    %101 = arith.mulf %100, %97 : vector<2x32xf32>
    %102 = arith.addf %99, %101 : vector<2x32xf32>
    %103 = vector.extract_strided_slice %95 {offsets = [0, 64], sizes = [2, 32], strides = [1, 1]} : vector<2x96xf32> to vector<2x32xf32>
    %104 = math.tanh %102 : vector<2x32xf32>
    %105 = arith.mulf %103, %104 : vector<2x32xf32>
    %106 = arith.index_cast %c3_i32 : i32 to index
    %c0_28 = arith.constant 0 : index
    %c0_29 = arith.constant 0 : index
    %107 = vector.load %arg3[%106, %c0_28, %c0_29] : memref<8x2x32xf32, #tpu.memory_space<vmem>>, vector<1x2x32xf32>
    %108 = vector.shape_cast %107 : vector<1x2x32xf32> to vector<2x32xf32>
    %109 = vector.shape_cast %105 : vector<2x32xf32> to vector<1x2x32xf32>
    tpu.vector_store %arg3[%106, %c0_28, %c0_29], %109 {strides = array<i32>} : memref<8x2x32xf32, #tpu.memory_space<vmem>>, vector<1x2x32xf32>,
    %c4_i32 = arith.constant 4 : i32
    %110 = arith.index_cast %c4_i32 : i32 to index
    %c0_30 = arith.constant 0 : index
    %c0_31 = arith.constant 0 : index
    %111 = vector.load %arg1[%110, %c0_30, %c0_31] : memref<8x2x128xf32, #tpu.memory_space<vmem>>, vector<1x2x128xf32>
    %112 = vector.shape_cast %111 : vector<1x2x128xf32> to vector<2x128xf32>
    %113 = arith.truncf %105 : vector<2x32xf32> to vector<2x32xbf16>
    %cst_32 = arith.constant dense<0.000000e+00> : vector<2x128xf32>
    %114 = tpu.matmul %113, %3, %cst_32 {dimension_numbers = #tpu.dot_dimension_numbers<[1], [0], [0], [1], [0, 0, 1, 1], [], []>} : vector<2x32xbf16>, vector<32x128xbf16>, vector<2x128xf32> -> vector<2x128xf32>
    %115 = arith.addf %112, %114 : vector<2x128xf32>
    %116 = vector.extract_strided_slice %115 {offsets = [0, 0], sizes = [2, 96], strides = [1, 1]} : vector<2x128xf32> to vector<2x96xf32>
    %117 = arith.negf %116 : vector<2x96xf32>
    %118 = math.exp %117 : vector<2x96xf32>
    %cst_33 = arith.constant 1.000000e+00 : f32
    %119 = vector.broadcast %cst_33 : f32 to vector<2x96xf32>
    %120 = arith.addf %119, %118 : vector<2x96xf32>
    %121 = arith.divf %119, %120 : vector<2x96xf32>
    %122 = vector.extract_strided_slice %115 {offsets = [0, 96], sizes = [2, 32], strides = [1, 1]} : vector<2x128xf32> to vector<2x32xf32>
    %123 = math.tanh %122 : vector<2x32xf32>
    %124 = vector.extract_strided_slice %121 {offsets = [0, 32], sizes = [2, 32], strides = [1, 1]} : vector<2x96xf32> to vector<2x32xf32>
    %125 = arith.mulf %124, %102 : vector<2x32xf32>
    %126 = vector.extract_strided_slice %121 {offsets = [0, 0], sizes = [2, 32], strides = [1, 1]} : vector<2x96xf32> to vector<2x32xf32>
    %127 = arith.mulf %126, %123 : vector<2x32xf32>
    %128 = arith.addf %125, %127 : vector<2x32xf32>
    %129 = vector.extract_strided_slice %121 {offsets = [0, 64], sizes = [2, 32], strides = [1, 1]} : vector<2x96xf32> to vector<2x32xf32>
    %130 = math.tanh %128 : vector<2x32xf32>
    %131 = arith.mulf %129, %130 : vector<2x32xf32>
    %132 = arith.index_cast %c4_i32 : i32 to index
    %c0_34 = arith.constant 0 : index
    %c0_35 = arith.constant 0 : index
    %133 = vector.load %arg3[%132, %c0_34, %c0_35] : memref<8x2x32xf32, #tpu.memory_space<vmem>>, vector<1x2x32xf32>
    %134 = vector.shape_cast %133 : vector<1x2x32xf32> to vector<2x32xf32>
    %135 = vector.shape_cast %131 : vector<2x32xf32> to vector<1x2x32xf32>
    tpu.vector_store %arg3[%132, %c0_34, %c0_35], %135 {strides = array<i32>} : memref<8x2x32xf32, #tpu.memory_space<vmem>>, vector<1x2x32xf32>,
    %c5_i32 = arith.constant 5 : i32
    %136 = arith.index_cast %c5_i32 : i32 to index
    %c0_36 = arith.constant 0 : index
    %c0_37 = arith.constant 0 : index
    %137 = vector.load %arg1[%136, %c0_36, %c0_37] : memref<8x2x128xf32, #tpu.memory_space<vmem>>, vector<1x2x128xf32>
    %138 = vector.shape_cast %137 : vector<1x2x128xf32> to vector<2x128xf32>
    %139 = arith.truncf %131 : vector<2x32xf32> to vector<2x32xbf16>
    %cst_38 = arith.constant dense<0.000000e+00> : vector<2x128xf32>
    %140 = tpu.matmul %139, %3, %cst_38 {dimension_numbers = #tpu.dot_dimension_numbers<[1], [0], [0], [1], [0, 0, 1, 1], [], []>} : vector<2x32xbf16>, vector<32x128xbf16>, vector<2x128xf32> -> vector<2x128xf32>
    %141 = arith.addf %138, %140 : vector<2x128xf32>
    %142 = vector.extract_strided_slice %141 {offsets = [0, 0], sizes = [2, 96], strides = [1, 1]} : vector<2x128xf32> to vector<2x96xf32>
    %143 = arith.negf %142 : vector<2x96xf32>
    %144 = math.exp %143 : vector<2x96xf32>
    %cst_39 = arith.constant 1.000000e+00 : f32
    %145 = vector.broadcast %cst_39 : f32 to vector<2x96xf32>
    %146 = arith.addf %145, %144 : vector<2x96xf32>
    %147 = arith.divf %145, %146 : vector<2x96xf32>
    %148 = vector.extract_strided_slice %141 {offsets = [0, 96], sizes = [2, 32], strides = [1, 1]} : vector<2x128xf32> to vector<2x32xf32>
    %149 = math.tanh %148 : vector<2x32xf32>
    %150 = vector.extract_strided_slice %147 {offsets = [0, 32], sizes = [2, 32], strides = [1, 1]} : vector<2x96xf32> to vector<2x32xf32>
    %151 = arith.mulf %150, %128 : vector<2x32xf32>
    %152 = vector.extract_strided_slice %147 {offsets = [0, 0], sizes = [2, 32], strides = [1, 1]} : vector<2x96xf32> to vector<2x32xf32>
    %153 = arith.mulf %152, %149 : vector<2x32xf32>
    %154 = arith.addf %151, %153 : vector<2x32xf32>
    %155 = vector.extract_strided_slice %147 {offsets = [0, 64], sizes = [2, 32], strides = [1, 1]} : vector<2x96xf32> to vector<2x32xf32>
    %156 = math.tanh %154 : vector<2x32xf32>
    %157 = arith.mulf %155, %156 : vector<2x32xf32>
    %158 = arith.index_cast %c5_i32 : i32 to index
    %c0_40 = arith.constant 0 : index
    %c0_41 = arith.constant 0 : index
    %159 = vector.load %arg3[%158, %c0_40, %c0_41] : memref<8x2x32xf32, #tpu.memory_space<vmem>>, vector<1x2x32xf32>
    %160 = vector.shape_cast %159 : vector<1x2x32xf32> to vector<2x32xf32>
    %161 = vector.shape_cast %157 : vector<2x32xf32> to vector<1x2x32xf32>
    tpu.vector_store %arg3[%158, %c0_40, %c0_41], %161 {strides = array<i32>} : memref<8x2x32xf32, #tpu.memory_space<vmem>>, vector<1x2x32xf32>,
    %c6_i32 = arith.constant 6 : i32
    %162 = arith.index_cast %c6_i32 : i32 to index
    %c0_42 = arith.constant 0 : index
    %c0_43 = arith.constant 0 : index
    %163 = vector.load %arg1[%162, %c0_42, %c0_43] : memref<8x2x128xf32, #tpu.memory_space<vmem>>, vector<1x2x128xf32>
    %164 = vector.shape_cast %163 : vector<1x2x128xf32> to vector<2x128xf32>
    %165 = arith.truncf %157 : vector<2x32xf32> to vector<2x32xbf16>
    %cst_44 = arith.constant dense<0.000000e+00> : vector<2x128xf32>
    %166 = tpu.matmul %165, %3, %cst_44 {dimension_numbers = #tpu.dot_dimension_numbers<[1], [0], [0], [1], [0, 0, 1, 1], [], []>} : vector<2x32xbf16>, vector<32x128xbf16>, vector<2x128xf32> -> vector<2x128xf32>
    %167 = arith.addf %164, %166 : vector<2x128xf32>
    %168 = vector.extract_strided_slice %167 {offsets = [0, 0], sizes = [2, 96], strides = [1, 1]} : vector<2x128xf32> to vector<2x96xf32>
    %169 = arith.negf %168 : vector<2x96xf32>
    %170 = math.exp %169 : vector<2x96xf32>
    %cst_45 = arith.constant 1.000000e+00 : f32
    %171 = vector.broadcast %cst_45 : f32 to vector<2x96xf32>
    %172 = arith.addf %171, %170 : vector<2x96xf32>
    %173 = arith.divf %171, %172 : vector<2x96xf32>
    %174 = vector.extract_strided_slice %167 {offsets = [0, 96], sizes = [2, 32], strides = [1, 1]} : vector<2x128xf32> to vector<2x32xf32>
    %175 = math.tanh %174 : vector<2x32xf32>
    %176 = vector.extract_strided_slice %173 {offsets = [0, 32], sizes = [2, 32], strides = [1, 1]} : vector<2x96xf32> to vector<2x32xf32>
    %177 = arith.mulf %176, %154 : vector<2x32xf32>
    %178 = vector.extract_strided_slice %173 {offsets = [0, 0], sizes = [2, 32], strides = [1, 1]} : vector<2x96xf32> to vector<2x32xf32>
    %179 = arith.mulf %178, %175 : vector<2x32xf32>
    %180 = arith.addf %177, %179 : vector<2x32xf32>
    %181 = vector.extract_strided_slice %173 {offsets = [0, 64], sizes = [2, 32], strides = [1, 1]} : vector<2x96xf32> to vector<2x32xf32>
    %182 = math.tanh %180 : vector<2x32xf32>
    %183 = arith.mulf %181, %182 : vector<2x32xf32>
    %184 = arith.index_cast %c6_i32 : i32 to index
    %c0_46 = arith.constant 0 : index
    %c0_47 = arith.constant 0 : index
    %185 = vector.load %arg3[%184, %c0_46, %c0_47] : memref<8x2x32xf32, #tpu.memory_space<vmem>>, vector<1x2x32xf32>
    %186 = vector.shape_cast %185 : vector<1x2x32xf32> to vector<2x32xf32>
    %187 = vector.shape_cast %183 : vector<2x32xf32> to vector<1x2x32xf32>
    tpu.vector_store %arg3[%184, %c0_46, %c0_47], %187 {strides = array<i32>} : memref<8x2x32xf32, #tpu.memory_space<vmem>>, vector<1x2x32xf32>,
    %c7_i32 = arith.constant 7 : i32
    %188 = arith.index_cast %c7_i32 : i32 to index
    %c0_48 = arith.constant 0 : index
    %c0_49 = arith.constant 0 : index
    %189 = vector.load %arg1[%188, %c0_48, %c0_49] : memref<8x2x128xf32, #tpu.memory_space<vmem>>, vector<1x2x128xf32>
    %190 = vector.shape_cast %189 : vector<1x2x128xf32> to vector<2x128xf32>
    %191 = arith.truncf %183 : vector<2x32xf32> to vector<2x32xbf16>
    %cst_50 = arith.constant dense<0.000000e+00> : vector<2x128xf32>
    %192 = tpu.matmul %191, %3, %cst_50 {dimension_numbers = #tpu.dot_dimension_numbers<[1], [0], [0], [1], [0, 0, 1, 1], [], []>} : vector<2x32xbf16>, vector<32x128xbf16>, vector<2x128xf32> -> vector<2x128xf32>
    %193 = arith.addf %190, %192 : vector<2x128xf32>
    %194 = vector.extract_strided_slice %193 {offsets = [0, 0], sizes = [2, 96], strides = [1, 1]} : vector<2x128xf32> to vector<2x96xf32>
    %195 = arith.negf %194 : vector<2x96xf32>
    %196 = math.exp %195 : vector<2x96xf32>
    %cst_51 = arith.constant 1.000000e+00 : f32
    %197 = vector.broadcast %cst_51 : f32 to vector<2x96xf32>
    %198 = arith.addf %197, %196 : vector<2x96xf32>
    %199 = arith.divf %197, %198 : vector<2x96xf32>
    %200 = vector.extract_strided_slice %193 {offsets = [0, 96], sizes = [2, 32], strides = [1, 1]} : vector<2x128xf32> to vector<2x32xf32>
    %201 = math.tanh %200 : vector<2x32xf32>
    %202 = vector.extract_strided_slice %199 {offsets = [0, 32], sizes = [2, 32], strides = [1, 1]} : vector<2x96xf32> to vector<2x32xf32>
    %203 = arith.mulf %202, %180 : vector<2x32xf32>
    %204 = vector.extract_strided_slice %199 {offsets = [0, 0], sizes = [2, 32], strides = [1, 1]} : vector<2x96xf32> to vector<2x32xf32>
    %205 = arith.mulf %204, %201 : vector<2x32xf32>
    %206 = arith.addf %203, %205 : vector<2x32xf32>
    %207 = vector.extract_strided_slice %199 {offsets = [0, 64], sizes = [2, 32], strides = [1, 1]} : vector<2x96xf32> to vector<2x32xf32>
    %208 = math.tanh %206 : vector<2x32xf32>
    %209 = arith.mulf %207, %208 : vector<2x32xf32>
    %210 = arith.index_cast %c7_i32 : i32 to index
    %c0_52 = arith.constant 0 : index
    %c0_53 = arith.constant 0 : index
    %211 = vector.load %arg3[%210, %c0_52, %c0_53] : memref<8x2x32xf32, #tpu.memory_space<vmem>>, vector<1x2x32xf32>
    %212 = vector.shape_cast %211 : vector<1x2x32xf32> to vector<2x32xf32>
    %213 = vector.shape_cast %209 : vector<2x32xf32> to vector<1x2x32xf32>
    tpu.vector_store %arg3[%210, %c0_52, %c0_53], %213 {strides = array<i32>} : memref<8x2x32xf32, #tpu.memory_space<vmem>>, vector<1x2x32xf32>,
    %c8_i32 = arith.constant 8 : i32
    %c0_54 = arith.constant 0 : index
    %c0_55 = arith.constant 0 : index
    %214 = vector.load %arg4[%c0_54, %c0_55] : memref<2x32xf32, #tpu.memory_space<vmem>>, vector<2x32xf32>
    tpu.vector_store %arg4[%c0_54, %c0_55], %209 {strides = array<i32>} : memref<2x32xf32, #tpu.memory_space<vmem>>, vector<2x32xf32>,
    %c0_56 = arith.constant 0 : index
    %c0_57 = arith.constant 0 : index
    %215 = vector.load %arg5[%c0_56, %c0_57] : memref<2x32xf32, #tpu.memory_space<vmem>>, vector<2x32xf32>
    tpu.vector_store %arg5[%c0_56, %c0_57], %206 {strides = array<i32>} : memref<2x32xf32, #tpu.memory_space<vmem>>, vector<2x32xf32>,
    return
  }
  func.func @transform_0(%arg0: i32) -> (i32, i32, i32) {
    %c0_i32 = arith.constant 0 : i32
    %c0_i32_0 = arith.constant 0 : i32
    %c0_i32_1 = arith.constant 0 : i32
    return %arg0, %c0_i32, %c0_i32_0 : i32, i32, i32
  }
  func.func @transform_1(%arg0: i32) -> (i32, i32) {
    %c0_i32 = arith.constant 0 : i32
    %c0_i32_0 = arith.constant 0 : i32
    %c0_i32_1 = arith.constant 0 : i32
    return %c0_i32, %c0_i32_0 : i32, i32
  }
  func.func @transform_2(%arg0: i32) -> (i32, i32, i32) {
    %c0_i32 = arith.constant 0 : i32
    %c0_i32_0 = arith.constant 0 : i32
    %c0_i32_1 = arith.constant 0 : i32
    return %arg0, %c0_i32, %c0_i32_0 : i32, i32, i32
  }
}

module attributes {stable_mosaic.version = 11 : i64} {
  func.func @mlp_gates_kernel(%arg0: i32, %arg1: memref<16x16xf32, #tpu.memory_space<vmem>>, %arg2: memref<16x32xbf16, #tpu.memory_space<vmem>>, %arg3: memref<1x32xf32, #tpu.memory_space<vmem>>, %arg4: memref<1x32xf32, #tpu.memory_space<vmem>>, %arg5: memref<1x32xf32, #tpu.memory_space<vmem>>, %arg6: memref<32x32xbf16, #tpu.memory_space<vmem>>, %arg7: memref<1x32xf32, #tpu.memory_space<vmem>>, %arg8: memref<1x32xf32, #tpu.memory_space<vmem>>, %arg9: memref<1x32xf32, #tpu.memory_space<vmem>>, %arg10: memref<32x128xbf16, #tpu.memory_space<vmem>>, %arg11: memref<1x128xf32, #tpu.memory_space<vmem>>, %arg12: memref<16x128xf32, #tpu.memory_space<vmem>>) attributes {dimension_semantics = [#tpu.dimension_semantics<parallel>], iteration_bounds = array<i64: 1>, scalar_prefetch = 0 : i64, scratch_operands = 0 : i64, tpu.core_type = #tpu.core_type<tc>, window_params = [{transform_indices = @transform_0, window_bounds = array<i64: 16, 16>}, {pipeline_mode = #tpu.pipeline_mode<synchronous>, transform_indices = @transform_1, window_bounds = array<i64: 16, 32>}, {pipeline_mode = #tpu.pipeline_mode<synchronous>, transform_indices = @transform_2, window_bounds = array<i64: 1, 32>}, {pipeline_mode = #tpu.pipeline_mode<synchronous>, transform_indices = @transform_3, window_bounds = array<i64: 1, 32>}, {pipeline_mode = #tpu.pipeline_mode<synchronous>, transform_indices = @transform_4, window_bounds = array<i64: 1, 32>}, {pipeline_mode = #tpu.pipeline_mode<synchronous>, transform_indices = @transform_5, window_bounds = array<i64: 32, 32>}, {pipeline_mode = #tpu.pipeline_mode<synchronous>, transform_indices = @transform_6, window_bounds = array<i64: 1, 32>}, {pipeline_mode = #tpu.pipeline_mode<synchronous>, transform_indices = @transform_7, window_bounds = array<i64: 1, 32>}, {pipeline_mode = #tpu.pipeline_mode<synchronous>, transform_indices = @transform_8, window_bounds = array<i64: 1, 32>}, {pipeline_mode = #tpu.pipeline_mode<synchronous>, transform_indices = @transform_9, window_bounds = array<i64: 32, 128>}, {pipeline_mode = #tpu.pipeline_mode<synchronous>, transform_indices = @transform_10, window_bounds = array<i64: 1, 128>}, {transform_indices = @transform_11, window_bounds = array<i64: 16, 128>}]} {
    %c0 = arith.constant 0 : index
    %c0_0 = arith.constant 0 : index
    %0 = vector.load %arg1[%c0, %c0_0] : memref<16x16xf32, #tpu.memory_space<vmem>>, vector<16x16xf32>
    %c0_1 = arith.constant 0 : index
    %c0_2 = arith.constant 0 : index
    %1 = vector.load %arg2[%c0_1, %c0_2] : memref<16x32xbf16, #tpu.memory_space<vmem>>, vector<16x32xbf16>
    %2 = arith.truncf %0 : vector<16x16xf32> to vector<16x16xbf16>
    %cst = arith.constant dense<0.000000e+00> : vector<16x32xf32>
    %3 = tpu.matmul %2, %1, %cst {dimension_numbers = #tpu.dot_dimension_numbers<[1], [0], [0], [1], [0, 0, 1, 1], [], []>} : vector<16x16xbf16>, vector<16x32xbf16>, vector<16x32xf32> -> vector<16x32xf32>
    %c0_3 = arith.constant 0 : index
    %c0_4 = arith.constant 0 : index
    %4 = vector.load %arg3[%c0_3, %c0_4] : memref<1x32xf32, #tpu.memory_space<vmem>>, vector<1x32xf32>
    %5 = vector.broadcast %4 : vector<1x32xf32> to vector<16x32xf32>
    %6 = arith.addf %3, %5 : vector<16x32xf32>
    %c0_5 = arith.constant 0 : index
    %c0_6 = arith.constant 0 : index
    %7 = vector.load %arg4[%c0_5, %c0_6] : memref<1x32xf32, #tpu.memory_space<vmem>>, vector<1x32xf32>
    %c0_7 = arith.constant 0 : index
    %c0_8 = arith.constant 0 : index
    %8 = vector.load %arg5[%c0_7, %c0_8] : memref<1x32xf32, #tpu.memory_space<vmem>>, vector<1x32xf32>
    %cst_9 = arith.constant dense<0.000000e+00> : vector<16xf32>
    %9 = vector.multi_reduction <add>, %6, %cst_9 [1] : vector<16x32xf32> to vector<16xf32>
    %10 = vector.shape_cast %9 : vector<16xf32> to vector<16x1xf32>
    %cst_10 = arith.constant 3.200000e+01 : f32
    %11 = vector.broadcast %cst_10 : f32 to vector<16x1xf32>
    %12 = arith.divf %10, %11 : vector<16x1xf32>
    %13 = vector.broadcast %12 : vector<16x1xf32> to vector<16x32xf32>
    %14 = arith.subf %6, %13 : vector<16x32xf32>
    %15 = arith.mulf %14, %14 : vector<16x32xf32>
    %cst_11 = arith.constant dense<0.000000e+00> : vector<16xf32>
    %16 = vector.multi_reduction <add>, %15, %cst_11 [1] : vector<16x32xf32> to vector<16xf32>
    %17 = vector.shape_cast %16 : vector<16xf32> to vector<16x1xf32>
    %cst_12 = arith.constant 3.200000e+01 : f32
    %18 = vector.broadcast %cst_12 : f32 to vector<16x1xf32>
    %19 = arith.divf %17, %18 : vector<16x1xf32>
    %20 = vector.broadcast %12 : vector<16x1xf32> to vector<16x32xf32>
    %21 = arith.subf %6, %20 : vector<16x32xf32>
    %cst_13 = arith.constant 9.99999974E-6 : f32
    %22 = vector.broadcast %cst_13 : f32 to vector<16x1xf32>
    %23 = arith.addf %19, %22 : vector<16x1xf32>
    %24 = math.rsqrt %23 : vector<16x1xf32>
    %25 = vector.broadcast %24 : vector<16x1xf32> to vector<16x32xf32>
    %26 = arith.mulf %21, %25 : vector<16x32xf32>
    %27 = vector.broadcast %7 : vector<1x32xf32> to vector<16x32xf32>
    %28 = arith.mulf %26, %27 : vector<16x32xf32>
    %29 = vector.broadcast %8 : vector<1x32xf32> to vector<16x32xf32>
    %30 = arith.addf %28, %29 : vector<16x32xf32>
    %cst_14 = arith.constant 0.000000e+00 : f32
    %31 = vector.broadcast %cst_14 : f32 to vector<16x32xf32>
    %32 = arith.maximumf %30, %31 : vector<16x32xf32>
    %c0_15 = arith.constant 0 : index
    %c0_16 = arith.constant 0 : index
    %33 = vector.load %arg6[%c0_15, %c0_16] : memref<32x32xbf16, #tpu.memory_space<vmem>>, vector<32x32xbf16>
    %34 = arith.truncf %32 : vector<16x32xf32> to vector<16x32xbf16>
    %cst_17 = arith.constant dense<0.000000e+00> : vector<16x32xf32>
    %35 = tpu.matmul %34, %33, %cst_17 {dimension_numbers = #tpu.dot_dimension_numbers<[1], [0], [0], [1], [0, 0, 1, 1], [], []>} : vector<16x32xbf16>, vector<32x32xbf16>, vector<16x32xf32> -> vector<16x32xf32>
    %c0_18 = arith.constant 0 : index
    %c0_19 = arith.constant 0 : index
    %36 = vector.load %arg7[%c0_18, %c0_19] : memref<1x32xf32, #tpu.memory_space<vmem>>, vector<1x32xf32>
    %37 = vector.broadcast %36 : vector<1x32xf32> to vector<16x32xf32>
    %38 = arith.addf %35, %37 : vector<16x32xf32>
    %c0_20 = arith.constant 0 : index
    %c0_21 = arith.constant 0 : index
    %39 = vector.load %arg8[%c0_20, %c0_21] : memref<1x32xf32, #tpu.memory_space<vmem>>, vector<1x32xf32>
    %c0_22 = arith.constant 0 : index
    %c0_23 = arith.constant 0 : index
    %40 = vector.load %arg9[%c0_22, %c0_23] : memref<1x32xf32, #tpu.memory_space<vmem>>, vector<1x32xf32>
    %cst_24 = arith.constant dense<0.000000e+00> : vector<16xf32>
    %41 = vector.multi_reduction <add>, %38, %cst_24 [1] : vector<16x32xf32> to vector<16xf32>
    %42 = vector.shape_cast %41 : vector<16xf32> to vector<16x1xf32>
    %cst_25 = arith.constant 3.200000e+01 : f32
    %43 = vector.broadcast %cst_25 : f32 to vector<16x1xf32>
    %44 = arith.divf %42, %43 : vector<16x1xf32>
    %45 = vector.broadcast %44 : vector<16x1xf32> to vector<16x32xf32>
    %46 = arith.subf %38, %45 : vector<16x32xf32>
    %47 = arith.mulf %46, %46 : vector<16x32xf32>
    %cst_26 = arith.constant dense<0.000000e+00> : vector<16xf32>
    %48 = vector.multi_reduction <add>, %47, %cst_26 [1] : vector<16x32xf32> to vector<16xf32>
    %49 = vector.shape_cast %48 : vector<16xf32> to vector<16x1xf32>
    %cst_27 = arith.constant 3.200000e+01 : f32
    %50 = vector.broadcast %cst_27 : f32 to vector<16x1xf32>
    %51 = arith.divf %49, %50 : vector<16x1xf32>
    %52 = vector.broadcast %44 : vector<16x1xf32> to vector<16x32xf32>
    %53 = arith.subf %38, %52 : vector<16x32xf32>
    %cst_28 = arith.constant 9.99999974E-6 : f32
    %54 = vector.broadcast %cst_28 : f32 to vector<16x1xf32>
    %55 = arith.addf %51, %54 : vector<16x1xf32>
    %56 = math.rsqrt %55 : vector<16x1xf32>
    %57 = vector.broadcast %56 : vector<16x1xf32> to vector<16x32xf32>
    %58 = arith.mulf %53, %57 : vector<16x32xf32>
    %59 = vector.broadcast %39 : vector<1x32xf32> to vector<16x32xf32>
    %60 = arith.mulf %58, %59 : vector<16x32xf32>
    %61 = vector.broadcast %40 : vector<1x32xf32> to vector<16x32xf32>
    %62 = arith.addf %60, %61 : vector<16x32xf32>
    %cst_29 = arith.constant 0.000000e+00 : f32
    %63 = vector.broadcast %cst_29 : f32 to vector<16x32xf32>
    %64 = arith.maximumf %62, %63 : vector<16x32xf32>
    %c0_30 = arith.constant 0 : index
    %c0_31 = arith.constant 0 : index
    %65 = vector.load %arg10[%c0_30, %c0_31] : memref<32x128xbf16, #tpu.memory_space<vmem>>, vector<32x128xbf16>
    %66 = arith.truncf %64 : vector<16x32xf32> to vector<16x32xbf16>
    %cst_32 = arith.constant dense<0.000000e+00> : vector<16x128xf32>
    %67 = tpu.matmul %66, %65, %cst_32 {dimension_numbers = #tpu.dot_dimension_numbers<[1], [0], [0], [1], [0, 0, 1, 1], [], []>} : vector<16x32xbf16>, vector<32x128xbf16>, vector<16x128xf32> -> vector<16x128xf32>
    %c0_33 = arith.constant 0 : index
    %c0_34 = arith.constant 0 : index
    %68 = vector.load %arg11[%c0_33, %c0_34] : memref<1x128xf32, #tpu.memory_space<vmem>>, vector<1x128xf32>
    %69 = vector.broadcast %68 : vector<1x128xf32> to vector<16x128xf32>
    %70 = arith.addf %67, %69 : vector<16x128xf32>
    %c0_35 = arith.constant 0 : index
    %c0_36 = arith.constant 0 : index
    %71 = vector.load %arg12[%c0_35, %c0_36] : memref<16x128xf32, #tpu.memory_space<vmem>>, vector<16x128xf32>
    tpu.vector_store %arg12[%c0_35, %c0_36], %70 {strides = array<i32>} : memref<16x128xf32, #tpu.memory_space<vmem>>, vector<16x128xf32>,
    return
  }
  func.func @transform_0(%arg0: i32) -> (i32, i32) {
    %c0_i32 = arith.constant 0 : i32
    %c0_i32_0 = arith.constant 0 : i32
    return %arg0, %c0_i32 : i32, i32
  }
  func.func @transform_1(%arg0: i32) -> (i32, i32) {
    %c0_i32 = arith.constant 0 : i32
    %c0_i32_0 = arith.constant 0 : i32
    %c0_i32_1 = arith.constant 0 : i32
    return %c0_i32, %c0_i32_0 : i32, i32
  }
  func.func @transform_2(%arg0: i32) -> (i32, i32) {
    %c0_i32 = arith.constant 0 : i32
    %c0_i32_0 = arith.constant 0 : i32
    %c0_i32_1 = arith.constant 0 : i32
    return %c0_i32, %c0_i32_0 : i32, i32
  }
  func.func @transform_3(%arg0: i32) -> (i32, i32) {
    %c0_i32 = arith.constant 0 : i32
    %c0_i32_0 = arith.constant 0 : i32
    %c0_i32_1 = arith.constant 0 : i32
    return %c0_i32, %c0_i32_0 : i32, i32
  }
  func.func @transform_4(%arg0: i32) -> (i32, i32) {
    %c0_i32 = arith.constant 0 : i32
    %c0_i32_0 = arith.constant 0 : i32
    %c0_i32_1 = arith.constant 0 : i32
    return %c0_i32, %c0_i32_0 : i32, i32
  }
  func.func @transform_5(%arg0: i32) -> (i32, i32) {
    %c0_i32 = arith.constant 0 : i32
    %c0_i32_0 = arith.constant 0 : i32
    %c0_i32_1 = arith.constant 0 : i32
    return %c0_i32, %c0_i32_0 : i32, i32
  }
  func.func @transform_6(%arg0: i32) -> (i32, i32) {
    %c0_i32 = arith.constant 0 : i32
    %c0_i32_0 = arith.constant 0 : i32
    %c0_i32_1 = arith.constant 0 : i32
    return %c0_i32, %c0_i32_0 : i32, i32
  }
  func.func @transform_7(%arg0: i32) -> (i32, i32) {
    %c0_i32 = arith.constant 0 : i32
    %c0_i32_0 = arith.constant 0 : i32
    %c0_i32_1 = arith.constant 0 : i32
    return %c0_i32, %c0_i32_0 : i32, i32
  }
  func.func @transform_8(%arg0: i32) -> (i32, i32) {
    %c0_i32 = arith.constant 0 : i32
    %c0_i32_0 = arith.constant 0 : i32
    %c0_i32_1 = arith.constant 0 : i32
    return %c0_i32, %c0_i32_0 : i32, i32
  }
  func.func @transform_9(%arg0: i32) -> (i32, i32) {
    %c0_i32 = arith.constant 0 : i32
    %c0_i32_0 = arith.constant 0 : i32
    %c0_i32_1 = arith.constant 0 : i32
    return %c0_i32, %c0_i32_0 : i32, i32
  }
  func.func @transform_10(%arg0: i32) -> (i32, i32) {
    %c0_i32 = arith.constant 0 : i32
    %c0_i32_0 = arith.constant 0 : i32
    %c0_i32_1 = arith.constant 0 : i32
    return %c0_i32, %c0_i32_0 : i32, i32
  }
  func.func @transform_11(%arg0: i32) -> (i32, i32) {
    %c0_i32 = arith.constant 0 : i32
    %c0_i32_0 = arith.constant 0 : i32
    return %arg0, %c0_i32 : i32, i32
  }
}

module attributes {stable_mosaic.version = 11 : i64} {
  func.func @tatt_kernel(%arg0: i32, %arg1: memref<1x8x32xf32, #tpu.memory_space<vmem>>, %arg2: memref<32x96xbf16, #tpu.memory_space<vmem>>, %arg3: memref<1x96xf32, #tpu.memory_space<vmem>>, %arg4: memref<32x32xbf16, #tpu.memory_space<vmem>>, %arg5: memref<1x32xf32, #tpu.memory_space<vmem>>, %arg6: memref<1x32xf32, #tpu.memory_space<vmem>>, %arg7: memref<1x32xf32, #tpu.memory_space<vmem>>, %arg8: memref<32x64xbf16, #tpu.memory_space<vmem>>, %arg9: memref<1x64xf32, #tpu.memory_space<vmem>>, %arg10: memref<64x32xbf16, #tpu.memory_space<vmem>>, %arg11: memref<1x32xf32, #tpu.memory_space<vmem>>, %arg12: memref<1x32xf32, #tpu.memory_space<vmem>>, %arg13: memref<1x32xf32, #tpu.memory_space<vmem>>, %arg14: memref<1x8x32xf32, #tpu.memory_space<vmem>>) attributes {dimension_semantics = [#tpu.dimension_semantics<parallel>], iteration_bounds = array<i64: 2>, scalar_prefetch = 0 : i64, scratch_operands = 0 : i64, tpu.core_type = #tpu.core_type<tc>, window_params = [{transform_indices = @transform_0, window_bounds = array<i64: 1, 8, 32>}, {pipeline_mode = #tpu.pipeline_mode<synchronous>, transform_indices = @transform_1, window_bounds = array<i64: 32, 96>}, {pipeline_mode = #tpu.pipeline_mode<synchronous>, transform_indices = @transform_2, window_bounds = array<i64: 1, 96>}, {pipeline_mode = #tpu.pipeline_mode<synchronous>, transform_indices = @transform_3, window_bounds = array<i64: 32, 32>}, {pipeline_mode = #tpu.pipeline_mode<synchronous>, transform_indices = @transform_4, window_bounds = array<i64: 1, 32>}, {pipeline_mode = #tpu.pipeline_mode<synchronous>, transform_indices = @transform_5, window_bounds = array<i64: 1, 32>}, {pipeline_mode = #tpu.pipeline_mode<synchronous>, transform_indices = @transform_6, window_bounds = array<i64: 1, 32>}, {pipeline_mode = #tpu.pipeline_mode<synchronous>, transform_indices = @transform_7, window_bounds = array<i64: 32, 64>}, {pipeline_mode = #tpu.pipeline_mode<synchronous>, transform_indices = @transform_8, window_bounds = array<i64: 1, 64>}, {pipeline_mode = #tpu.pipeline_mode<synchronous>, transform_indices = @transform_9, window_bounds = array<i64: 64, 32>}, {pipeline_mode = #tpu.pipeline_mode<synchronous>, transform_indices = @transform_10, window_bounds = array<i64: 1, 32>}, {pipeline_mode = #tpu.pipeline_mode<synchronous>, transform_indices = @transform_11, window_bounds = array<i64: 1, 32>}, {pipeline_mode = #tpu.pipeline_mode<synchronous>, transform_indices = @transform_12, window_bounds = array<i64: 1, 32>}, {transform_indices = @transform_13, window_bounds = array<i64: 1, 8, 32>}]} {
    %c0 = arith.constant 0 : index
    %c0_0 = arith.constant 0 : index
    %c0_1 = arith.constant 0 : index
    %0 = vector.load %arg1[%c0, %c0_0, %c0_1] : memref<1x8x32xf32, #tpu.memory_space<vmem>>, vector<1x8x32xf32>
    %1 = vector.shape_cast %0 : vector<1x8x32xf32> to vector<8x32xf32>
    %c0_2 = arith.constant 0 : index
    %c0_3 = arith.constant 0 : index
    %2 = vector.load %arg2[%c0_2, %c0_3] : memref<32x96xbf16, #tpu.memory_space<vmem>>, vector<32x96xbf16>
    %3 = arith.truncf %1 : vector<8x32xf32> to vector<8x32xbf16>
    %cst = arith.constant dense<0.000000e+00> : vector<8x96xf32>
    %4 = tpu.matmul %3, %2, %cst {dimension_numbers = #tpu.dot_dimension_numbers<[1], [0], [0], [1], [0, 0, 1, 1], [], []>} : vector<8x32xbf16>, vector<32x96xbf16>, vector<8x96xf32> -> vector<8x96xf32>
    %c0_4 = arith.constant 0 : index
    %c0_5 = arith.constant 0 : index
    %5 = vector.load %arg3[%c0_4, %c0_5] : memref<1x96xf32, #tpu.memory_space<vmem>>, vector<1x96xf32>
    %6 = vector.broadcast %5 : vector<1x96xf32> to vector<8x96xf32>
    %7 = arith.addf %4, %6 : vector<8x96xf32>
    %8 = vector.extract_strided_slice %7 {offsets = [0, 0], sizes = [8, 32], strides = [1, 1]} : vector<8x96xf32> to vector<8x32xf32>
    %9 = vector.extract_strided_slice %7 {offsets = [0, 32], sizes = [8, 32], strides = [1, 1]} : vector<8x96xf32> to vector<8x32xf32>
    %10 = vector.extract_strided_slice %7 {offsets = [0, 64], sizes = [8, 32], strides = [1, 1]} : vector<8x96xf32> to vector<8x32xf32>
    %11 = arith.truncf %8 : vector<8x32xf32> to vector<8x32xbf16>
    %12 = arith.truncf %9 : vector<8x32xf32> to vector<8x32xbf16>
    %cst_6 = arith.constant dense<0.000000e+00> : vector<8x8xf32>
    %13 = tpu.matmul %11, %12, %cst_6 {dimension_numbers = #tpu.dot_dimension_numbers<[1], [1], [0], [0], [0, 0, 1, 0], [], []>} : vector<8x32xbf16>, vector<8x32xbf16>, vector<8x8xf32> -> vector<8x8xf32>
    %cst_7 = arith.constant 0.176776692 : f32
    %14 = vector.broadcast %cst_7 : f32 to vector<8x8xf32>
    %15 = arith.mulf %13, %14 : vector<8x8xf32>
    %cst_8 = arith.constant dense<0xFF800000> : vector<8xf32>
    %16 = vector.multi_reduction <maximumf>, %15, %cst_8 [1] : vector<8x8xf32> to vector<8xf32>
    %17 = vector.shape_cast %16 : vector<8xf32> to vector<8x1xf32>
    %18 = vector.broadcast %17 : vector<8x1xf32> to vector<8x8xf32>
    %19 = arith.subf %15, %18 : vector<8x8xf32>
    %20 = math.exp %19 : vector<8x8xf32>
    %cst_9 = arith.constant dense<0.000000e+00> : vector<8xf32>
    %21 = vector.multi_reduction <add>, %20, %cst_9 [1] : vector<8x8xf32> to vector<8xf32>
    %22 = vector.shape_cast %21 : vector<8xf32> to vector<8x1xf32>
    %23 = tpu.reciprocal %22 {approx = true} : vector<8x1xf32> -> vector<8x1xf32>
    %24 = vector.broadcast %23 : vector<8x1xf32> to vector<8x8xf32>
    %25 = arith.mulf %20, %24 : vector<8x8xf32>
    %26 = arith.truncf %25 : vector<8x8xf32> to vector<8x8xbf16>
    %27 = arith.truncf %10 : vector<8x32xf32> to vector<8x32xbf16>
    %cst_10 = arith.constant dense<0.000000e+00> : vector<8x32xf32>
    %28 = tpu.matmul %26, %27, %cst_10 {dimension_numbers = #tpu.dot_dimension_numbers<[1], [0], [0], [1], [0, 0, 1, 1], [], []>} : vector<8x8xbf16>, vector<8x32xbf16>, vector<8x32xf32> -> vector<8x32xf32>
    %c0_11 = arith.constant 0 : index
    %c0_12 = arith.constant 0 : index
    %29 = vector.load %arg4[%c0_11, %c0_12] : memref<32x32xbf16, #tpu.memory_space<vmem>>, vector<32x32xbf16>
    %30 = arith.truncf %28 : vector<8x32xf32> to vector<8x32xbf16>
    %cst_13 = arith.constant dense<0.000000e+00> : vector<8x32xf32>
    %31 = tpu.matmul %30, %29, %cst_13 {dimension_numbers = #tpu.dot_dimension_numbers<[1], [0], [0], [1], [0, 0, 1, 1], [], []>} : vector<8x32xbf16>, vector<32x32xbf16>, vector<8x32xf32> -> vector<8x32xf32>
    %c0_14 = arith.constant 0 : index
    %c0_15 = arith.constant 0 : index
    %32 = vector.load %arg5[%c0_14, %c0_15] : memref<1x32xf32, #tpu.memory_space<vmem>>, vector<1x32xf32>
    %33 = vector.broadcast %32 : vector<1x32xf32> to vector<8x32xf32>
    %34 = arith.addf %31, %33 : vector<8x32xf32>
    %c0_16 = arith.constant 0 : index
    %c0_17 = arith.constant 0 : index
    %35 = vector.load %arg6[%c0_16, %c0_17] : memref<1x32xf32, #tpu.memory_space<vmem>>, vector<1x32xf32>
    %c0_18 = arith.constant 0 : index
    %c0_19 = arith.constant 0 : index
    %36 = vector.load %arg7[%c0_18, %c0_19] : memref<1x32xf32, #tpu.memory_space<vmem>>, vector<1x32xf32>
    %cst_20 = arith.constant dense<0.000000e+00> : vector<8xf32>
    %37 = vector.multi_reduction <add>, %34, %cst_20 [1] : vector<8x32xf32> to vector<8xf32>
    %38 = vector.shape_cast %37 : vector<8xf32> to vector<8x1xf32>
    %cst_21 = arith.constant 3.200000e+01 : f32
    %39 = vector.broadcast %cst_21 : f32 to vector<8x1xf32>
    %40 = arith.divf %38, %39 : vector<8x1xf32>
    %41 = vector.broadcast %40 : vector<8x1xf32> to vector<8x32xf32>
    %42 = arith.subf %34, %41 : vector<8x32xf32>
    %43 = arith.mulf %42, %42 : vector<8x32xf32>
    %cst_22 = arith.constant dense<0.000000e+00> : vector<8xf32>
    %44 = vector.multi_reduction <add>, %43, %cst_22 [1] : vector<8x32xf32> to vector<8xf32>
    %45 = vector.shape_cast %44 : vector<8xf32> to vector<8x1xf32>
    %cst_23 = arith.constant 3.200000e+01 : f32
    %46 = vector.broadcast %cst_23 : f32 to vector<8x1xf32>
    %47 = arith.divf %45, %46 : vector<8x1xf32>
    %48 = vector.broadcast %40 : vector<8x1xf32> to vector<8x32xf32>
    %49 = arith.subf %34, %48 : vector<8x32xf32>
    %cst_24 = arith.constant 9.99999974E-6 : f32
    %50 = vector.broadcast %cst_24 : f32 to vector<8x1xf32>
    %51 = arith.addf %47, %50 : vector<8x1xf32>
    %52 = math.rsqrt %51 : vector<8x1xf32>
    %53 = vector.broadcast %52 : vector<8x1xf32> to vector<8x32xf32>
    %54 = arith.mulf %49, %53 : vector<8x32xf32>
    %55 = vector.broadcast %35 : vector<1x32xf32> to vector<8x32xf32>
    %56 = arith.mulf %54, %55 : vector<8x32xf32>
    %57 = vector.broadcast %36 : vector<1x32xf32> to vector<8x32xf32>
    %58 = arith.addf %56, %57 : vector<8x32xf32>
    %c0_25 = arith.constant 0 : index
    %c0_26 = arith.constant 0 : index
    %59 = vector.load %arg8[%c0_25, %c0_26] : memref<32x64xbf16, #tpu.memory_space<vmem>>, vector<32x64xbf16>
    %60 = arith.truncf %58 : vector<8x32xf32> to vector<8x32xbf16>
    %cst_27 = arith.constant dense<0.000000e+00> : vector<8x64xf32>
    %61 = tpu.matmul %60, %59, %cst_27 {dimension_numbers = #tpu.dot_dimension_numbers<[1], [0], [0], [1], [0, 0, 1, 1], [], []>} : vector<8x32xbf16>, vector<32x64xbf16>, vector<8x64xf32> -> vector<8x64xf32>
    %c0_28 = arith.constant 0 : index
    %c0_29 = arith.constant 0 : index
    %62 = vector.load %arg9[%c0_28, %c0_29] : memref<1x64xf32, #tpu.memory_space<vmem>>, vector<1x64xf32>
    %63 = vector.broadcast %62 : vector<1x64xf32> to vector<8x64xf32>
    %64 = arith.addf %61, %63 : vector<8x64xf32>
    %cst_30 = arith.constant 0.000000e+00 : f32
    %65 = vector.broadcast %cst_30 : f32 to vector<8x64xf32>
    %66 = arith.maximumf %64, %65 : vector<8x64xf32>
    %c0_31 = arith.constant 0 : index
    %c0_32 = arith.constant 0 : index
    %67 = vector.load %arg10[%c0_31, %c0_32] : memref<64x32xbf16, #tpu.memory_space<vmem>>, vector<64x32xbf16>
    %68 = arith.truncf %66 : vector<8x64xf32> to vector<8x64xbf16>
    %cst_33 = arith.constant dense<0.000000e+00> : vector<8x32xf32>
    %69 = tpu.matmul %68, %67, %cst_33 {dimension_numbers = #tpu.dot_dimension_numbers<[1], [0], [0], [1], [0, 0, 1, 1], [], []>} : vector<8x64xbf16>, vector<64x32xbf16>, vector<8x32xf32> -> vector<8x32xf32>
    %c0_34 = arith.constant 0 : index
    %c0_35 = arith.constant 0 : index
    %70 = vector.load %arg11[%c0_34, %c0_35] : memref<1x32xf32, #tpu.memory_space<vmem>>, vector<1x32xf32>
    %71 = vector.broadcast %70 : vector<1x32xf32> to vector<8x32xf32>
    %72 = arith.addf %69, %71 : vector<8x32xf32>
    %73 = arith.addf %58, %72 : vector<8x32xf32>
    %c0_36 = arith.constant 0 : index
    %c0_37 = arith.constant 0 : index
    %74 = vector.load %arg12[%c0_36, %c0_37] : memref<1x32xf32, #tpu.memory_space<vmem>>, vector<1x32xf32>
    %c0_38 = arith.constant 0 : index
    %c0_39 = arith.constant 0 : index
    %75 = vector.load %arg13[%c0_38, %c0_39] : memref<1x32xf32, #tpu.memory_space<vmem>>, vector<1x32xf32>
    %cst_40 = arith.constant dense<0.000000e+00> : vector<8xf32>
    %76 = vector.multi_reduction <add>, %73, %cst_40 [1] : vector<8x32xf32> to vector<8xf32>
    %77 = vector.shape_cast %76 : vector<8xf32> to vector<8x1xf32>
    %cst_41 = arith.constant 3.200000e+01 : f32
    %78 = vector.broadcast %cst_41 : f32 to vector<8x1xf32>
    %79 = arith.divf %77, %78 : vector<8x1xf32>
    %80 = vector.broadcast %79 : vector<8x1xf32> to vector<8x32xf32>
    %81 = arith.subf %73, %80 : vector<8x32xf32>
    %82 = arith.mulf %81, %81 : vector<8x32xf32>
    %cst_42 = arith.constant dense<0.000000e+00> : vector<8xf32>
    %83 = vector.multi_reduction <add>, %82, %cst_42 [1] : vector<8x32xf32> to vector<8xf32>
    %84 = vector.shape_cast %83 : vector<8xf32> to vector<8x1xf32>
    %cst_43 = arith.constant 3.200000e+01 : f32
    %85 = vector.broadcast %cst_43 : f32 to vector<8x1xf32>
    %86 = arith.divf %84, %85 : vector<8x1xf32>
    %87 = vector.broadcast %79 : vector<8x1xf32> to vector<8x32xf32>
    %88 = arith.subf %73, %87 : vector<8x32xf32>
    %cst_44 = arith.constant 9.99999974E-6 : f32
    %89 = vector.broadcast %cst_44 : f32 to vector<8x1xf32>
    %90 = arith.addf %86, %89 : vector<8x1xf32>
    %91 = math.rsqrt %90 : vector<8x1xf32>
    %92 = vector.broadcast %91 : vector<8x1xf32> to vector<8x32xf32>
    %93 = arith.mulf %88, %92 : vector<8x32xf32>
    %94 = vector.broadcast %74 : vector<1x32xf32> to vector<8x32xf32>
    %95 = arith.mulf %93, %94 : vector<8x32xf32>
    %96 = vector.broadcast %75 : vector<1x32xf32> to vector<8x32xf32>
    %97 = arith.addf %95, %96 : vector<8x32xf32>
    %c0_45 = arith.constant 0 : index
    %c0_46 = arith.constant 0 : index
    %c0_47 = arith.constant 0 : index
    %98 = vector.load %arg14[%c0_45, %c0_46, %c0_47] : memref<1x8x32xf32, #tpu.memory_space<vmem>>, vector<1x8x32xf32>
    %99 = vector.shape_cast %98 : vector<1x8x32xf32> to vector<8x32xf32>
    %100 = vector.shape_cast %97 : vector<8x32xf32> to vector<1x8x32xf32>
    tpu.vector_store %arg14[%c0_45, %c0_46, %c0_47], %100 {strides = array<i32>} : memref<1x8x32xf32, #tpu.memory_space<vmem>>, vector<1x8x32xf32>,
    return
  }
  func.func @transform_0(%arg0: i32) -> (i32, i32, i32) {
    %c0_i32 = arith.constant 0 : i32
    %c0_i32_0 = arith.constant 0 : i32
    %c0_i32_1 = arith.constant 0 : i32
    return %arg0, %c0_i32, %c0_i32_0 : i32, i32, i32
  }
  func.func @transform_1(%arg0: i32) -> (i32, i32) {
    %c0_i32 = arith.constant 0 : i32
    %c0_i32_0 = arith.constant 0 : i32
    %c0_i32_1 = arith.constant 0 : i32
    return %c0_i32, %c0_i32_0 : i32, i32
  }
  func.func @transform_2(%arg0: i32) -> (i32, i32) {
    %c0_i32 = arith.constant 0 : i32
    %c0_i32_0 = arith.constant 0 : i32
    %c0_i32_1 = arith.constant 0 : i32
    return %c0_i32, %c0_i32_0 : i32, i32
  }
  func.func @transform_3(%arg0: i32) -> (i32, i32) {
    %c0_i32 = arith.constant 0 : i32
    %c0_i32_0 = arith.constant 0 : i32
    %c0_i32_1 = arith.constant 0 : i32
    return %c0_i32, %c0_i32_0 : i32, i32
  }
  func.func @transform_4(%arg0: i32) -> (i32, i32) {
    %c0_i32 = arith.constant 0 : i32
    %c0_i32_0 = arith.constant 0 : i32
    %c0_i32_1 = arith.constant 0 : i32
    return %c0_i32, %c0_i32_0 : i32, i32
  }
  func.func @transform_5(%arg0: i32) -> (i32, i32) {
    %c0_i32 = arith.constant 0 : i32
    %c0_i32_0 = arith.constant 0 : i32
    %c0_i32_1 = arith.constant 0 : i32
    return %c0_i32, %c0_i32_0 : i32, i32
  }
  func.func @transform_6(%arg0: i32) -> (i32, i32) {
    %c0_i32 = arith.constant 0 : i32
    %c0_i32_0 = arith.constant 0 : i32
    %c0_i32_1 = arith.constant 0 : i32
    return %c0_i32, %c0_i32_0 : i32, i32
  }
  func.func @transform_7(%arg0: i32) -> (i32, i32) {
    %c0_i32 = arith.constant 0 : i32
    %c0_i32_0 = arith.constant 0 : i32
    %c0_i32_1 = arith.constant 0 : i32
    return %c0_i32, %c0_i32_0 : i32, i32
  }
  func.func @transform_8(%arg0: i32) -> (i32, i32) {
    %c0_i32 = arith.constant 0 : i32
    %c0_i32_0 = arith.constant 0 : i32
    %c0_i32_1 = arith.constant 0 : i32
    return %c0_i32, %c0_i32_0 : i32, i32
  }
  func.func @transform_9(%arg0: i32) -> (i32, i32) {
    %c0_i32 = arith.constant 0 : i32
    %c0_i32_0 = arith.constant 0 : i32
    %c0_i32_1 = arith.constant 0 : i32
    return %c0_i32, %c0_i32_0 : i32, i32
  }
  func.func @transform_10(%arg0: i32) -> (i32, i32) {
    %c0_i32 = arith.constant 0 : i32
    %c0_i32_0 = arith.constant 0 : i32
    %c0_i32_1 = arith.constant 0 : i32
    return %c0_i32, %c0_i32_0 : i32, i32
  }
  func.func @transform_11(%arg0: i32) -> (i32, i32) {
    %c0_i32 = arith.constant 0 : i32
    %c0_i32_0 = arith.constant 0 : i32
    %c0_i32_1 = arith.constant 0 : i32
    return %c0_i32, %c0_i32_0 : i32, i32
  }
  func.func @transform_12(%arg0: i32) -> (i32, i32) {
    %c0_i32 = arith.constant 0 : i32
    %c0_i32_0 = arith.constant 0 : i32
    %c0_i32_1 = arith.constant 0 : i32
    return %c0_i32, %c0_i32_0 : i32, i32
  }
  func.func @transform_13(%arg0: i32) -> (i32, i32, i32) {
    %c0_i32 = arith.constant 0 : i32
    %c0_i32_0 = arith.constant 0 : i32
    %c0_i32_1 = arith.constant 0 : i32
    return %arg0, %c0_i32, %c0_i32_0 : i32, i32, i32
  }
}

module attributes {stable_mosaic.version = 11 : i64} {
  func.func @se_kernel(%arg0: i32, %arg1: memref<2x128xf32, #tpu.memory_space<vmem>>, %arg2: memref<128x32xbf16, #tpu.memory_space<vmem>>, %arg3: memref<1x32xf32, #tpu.memory_space<vmem>>, %arg4: memref<1x32xf32, #tpu.memory_space<vmem>>, %arg5: memref<1x32xf32, #tpu.memory_space<vmem>>, %arg6: memref<32x32xbf16, #tpu.memory_space<vmem>>, %arg7: memref<1x32xf32, #tpu.memory_space<vmem>>, %arg8: memref<1x32xf32, #tpu.memory_space<vmem>>, %arg9: memref<1x32xf32, #tpu.memory_space<vmem>>, %arg10: memref<2x32xf32, #tpu.memory_space<vmem>>, %arg11: memref<2x32xf32, #tpu.memory_space<vmem>>) attributes {dimension_semantics = [#tpu.dimension_semantics<arbitrary>], iteration_bounds = array<i64: 2>, scalar_prefetch = 0 : i64, scratch_operands = 1 : i64, tpu.core_type = #tpu.core_type<tc>, window_params = [{transform_indices = @transform_0, window_bounds = array<i64: 2, 128>}, {transform_indices = @transform_1, window_bounds = array<i64: 128, 32>}, {pipeline_mode = #tpu.pipeline_mode<synchronous>, transform_indices = @transform_2, window_bounds = array<i64: 1, 32>}, {pipeline_mode = #tpu.pipeline_mode<synchronous>, transform_indices = @transform_3, window_bounds = array<i64: 1, 32>}, {pipeline_mode = #tpu.pipeline_mode<synchronous>, transform_indices = @transform_4, window_bounds = array<i64: 1, 32>}, {pipeline_mode = #tpu.pipeline_mode<synchronous>, transform_indices = @transform_5, window_bounds = array<i64: 32, 32>}, {pipeline_mode = #tpu.pipeline_mode<synchronous>, transform_indices = @transform_6, window_bounds = array<i64: 1, 32>}, {pipeline_mode = #tpu.pipeline_mode<synchronous>, transform_indices = @transform_7, window_bounds = array<i64: 1, 32>}, {pipeline_mode = #tpu.pipeline_mode<synchronous>, transform_indices = @transform_8, window_bounds = array<i64: 1, 32>}, {pipeline_mode = #tpu.pipeline_mode<synchronous>, transform_indices = @transform_9, window_bounds = array<i64: 2, 32>}]} {
    %c0_i32 = arith.constant 0 : i32
    %0 = arith.cmpi eq, %arg0, %c0_i32 : i32
    %1 = arith.extui %0 : i1 to i32
    %c0_i32_0 = arith.constant 0 : i32
    %2 = arith.cmpi ne, %1, %c0_i32_0 : i32
    scf.if %2 {
      %cst_9 = arith.constant 0.000000e+00 : f32
      %13 = vector.broadcast %cst_9 : f32 to vector<2x32xf32>
      %c0_10 = arith.constant 0 : index
      %c0_11 = arith.constant 0 : index
      %14 = vector.load %arg11[%c0_10, %c0_11] : memref<2x32xf32, #tpu.memory_space<vmem>>, vector<2x32xf32>
      tpu.vector_store %arg11[%c0_10, %c0_11], %13 {strides = array<i32>} : memref<2x32xf32, #tpu.memory_space<vmem>>, vector<2x32xf32>,
    } else {
    }
    %c0 = arith.constant 0 : index
    %c0_1 = arith.constant 0 : index
    %3 = vector.load %arg11[%c0, %c0_1] : memref<2x32xf32, #tpu.memory_space<vmem>>, vector<2x32xf32>
    %c0_2 = arith.constant 0 : index
    %c0_3 = arith.constant 0 : index
    %4 = vector.load %arg1[%c0_2, %c0_3] : memref<2x128xf32, #tpu.memory_space<vmem>>, vector<2x128xf32>
    %c0_4 = arith.constant 0 : index
    %c0_5 = arith.constant 0 : index
    %5 = vector.load %arg2[%c0_4, %c0_5] : memref<128x32xbf16, #tpu.memory_space<vmem>>, vector<128x32xbf16>
    %6 = arith.truncf %4 : vector<2x128xf32> to vector<2x128xbf16>
    %cst = arith.constant dense<0.000000e+00> : vector<2x32xf32>
    %7 = tpu.matmul %6, %5, %cst {dimension_numbers = #tpu.dot_dimension_numbers<[1], [0], [0], [1], [0, 0, 1, 1], [], []>} : vector<2x128xbf16>, vector<128x32xbf16>, vector<2x32xf32> -> vector<2x32xf32>
    %8 = arith.addf %3, %7 : vector<2x32xf32>
    %c0_6 = arith.constant 0 : index
    %c0_7 = arith.constant 0 : index
    %9 = vector.load %arg11[%c0_6, %c0_7] : memref<2x32xf32, #tpu.memory_space<vmem>>, vector<2x32xf32>
    tpu.vector_store %arg11[%c0_6, %c0_7], %8 {strides = array<i32>} : memref<2x32xf32, #tpu.memory_space<vmem>>, vector<2x32xf32>,
    %c1_i32 = arith.constant 1 : i32
    %10 = arith.cmpi eq, %arg0, %c1_i32 : i32
    %11 = arith.extui %10 : i1 to i32
    %c0_i32_8 = arith.constant 0 : i32
    %12 = arith.cmpi ne, %11, %c0_i32_8 : i32
    scf.if %12 {
      %c0_9 = arith.constant 0 : index
      %c0_10 = arith.constant 0 : index
      %13 = vector.load %arg11[%c0_9, %c0_10] : memref<2x32xf32, #tpu.memory_space<vmem>>, vector<2x32xf32>
      %c0_11 = arith.constant 0 : index
      %c0_12 = arith.constant 0 : index
      %14 = vector.load %arg3[%c0_11, %c0_12] : memref<1x32xf32, #tpu.memory_space<vmem>>, vector<1x32xf32>
      %15 = vector.broadcast %14 : vector<1x32xf32> to vector<2x32xf32>
      %16 = arith.addf %13, %15 : vector<2x32xf32>
      %c0_13 = arith.constant 0 : index
      %c0_14 = arith.constant 0 : index
      %17 = vector.load %arg4[%c0_13, %c0_14] : memref<1x32xf32, #tpu.memory_space<vmem>>, vector<1x32xf32>
      %c0_15 = arith.constant 0 : index
      %c0_16 = arith.constant 0 : index
      %18 = vector.load %arg5[%c0_15, %c0_16] : memref<1x32xf32, #tpu.memory_space<vmem>>, vector<1x32xf32>
      %cst_17 = arith.constant dense<0.000000e+00> : vector<2xf32>
      %19 = vector.multi_reduction <add>, %16, %cst_17 [1] : vector<2x32xf32> to vector<2xf32>
      %20 = vector.shape_cast %19 : vector<2xf32> to vector<2x1xf32>
      %cst_18 = arith.constant 3.200000e+01 : f32
      %21 = vector.broadcast %cst_18 : f32 to vector<2x1xf32>
      %22 = arith.divf %20, %21 : vector<2x1xf32>
      %23 = vector.broadcast %22 : vector<2x1xf32> to vector<2x32xf32>
      %24 = arith.subf %16, %23 : vector<2x32xf32>
      %25 = arith.mulf %24, %24 : vector<2x32xf32>
      %cst_19 = arith.constant dense<0.000000e+00> : vector<2xf32>
      %26 = vector.multi_reduction <add>, %25, %cst_19 [1] : vector<2x32xf32> to vector<2xf32>
      %27 = vector.shape_cast %26 : vector<2xf32> to vector<2x1xf32>
      %cst_20 = arith.constant 3.200000e+01 : f32
      %28 = vector.broadcast %cst_20 : f32 to vector<2x1xf32>
      %29 = arith.divf %27, %28 : vector<2x1xf32>
      %30 = vector.broadcast %22 : vector<2x1xf32> to vector<2x32xf32>
      %31 = arith.subf %16, %30 : vector<2x32xf32>
      %cst_21 = arith.constant 9.99999974E-6 : f32
      %32 = vector.broadcast %cst_21 : f32 to vector<2x1xf32>
      %33 = arith.addf %29, %32 : vector<2x1xf32>
      %34 = math.rsqrt %33 : vector<2x1xf32>
      %35 = vector.broadcast %34 : vector<2x1xf32> to vector<2x32xf32>
      %36 = arith.mulf %31, %35 : vector<2x32xf32>
      %37 = vector.broadcast %17 : vector<1x32xf32> to vector<2x32xf32>
      %38 = arith.mulf %36, %37 : vector<2x32xf32>
      %39 = vector.broadcast %18 : vector<1x32xf32> to vector<2x32xf32>
      %40 = arith.addf %38, %39 : vector<2x32xf32>
      %cst_22 = arith.constant 0.000000e+00 : f32
      %41 = vector.broadcast %cst_22 : f32 to vector<2x32xf32>
      %42 = arith.maximumf %40, %41 : vector<2x32xf32>
      %c0_23 = arith.constant 0 : index
      %c0_24 = arith.constant 0 : index
      %43 = vector.load %arg6[%c0_23, %c0_24] : memref<32x32xbf16, #tpu.memory_space<vmem>>, vector<32x32xbf16>
      %44 = arith.truncf %42 : vector<2x32xf32> to vector<2x32xbf16>
      %cst_25 = arith.constant dense<0.000000e+00> : vector<2x32xf32>
      %45 = tpu.matmul %44, %43, %cst_25 {dimension_numbers = #tpu.dot_dimension_numbers<[1], [0], [0], [1], [0, 0, 1, 1], [], []>} : vector<2x32xbf16>, vector<32x32xbf16>, vector<2x32xf32> -> vector<2x32xf32>
      %c0_26 = arith.constant 0 : index
      %c0_27 = arith.constant 0 : index
      %46 = vector.load %arg7[%c0_26, %c0_27] : memref<1x32xf32, #tpu.memory_space<vmem>>, vector<1x32xf32>
      %47 = vector.broadcast %46 : vector<1x32xf32> to vector<2x32xf32>
      %48 = arith.addf %45, %47 : vector<2x32xf32>
      %c0_28 = arith.constant 0 : index
      %c0_29 = arith.constant 0 : index
      %49 = vector.load %arg8[%c0_28, %c0_29] : memref<1x32xf32, #tpu.memory_space<vmem>>, vector<1x32xf32>
      %c0_30 = arith.constant 0 : index
      %c0_31 = arith.constant 0 : index
      %50 = vector.load %arg9[%c0_30, %c0_31] : memref<1x32xf32, #tpu.memory_space<vmem>>, vector<1x32xf32>
      %cst_32 = arith.constant dense<0.000000e+00> : vector<2xf32>
      %51 = vector.multi_reduction <add>, %48, %cst_32 [1] : vector<2x32xf32> to vector<2xf32>
      %52 = vector.shape_cast %51 : vector<2xf32> to vector<2x1xf32>
      %cst_33 = arith.constant 3.200000e+01 : f32
      %53 = vector.broadcast %cst_33 : f32 to vector<2x1xf32>
      %54 = arith.divf %52, %53 : vector<2x1xf32>
      %55 = vector.broadcast %54 : vector<2x1xf32> to vector<2x32xf32>
      %56 = arith.subf %48, %55 : vector<2x32xf32>
      %57 = arith.mulf %56, %56 : vector<2x32xf32>
      %cst_34 = arith.constant dense<0.000000e+00> : vector<2xf32>
      %58 = vector.multi_reduction <add>, %57, %cst_34 [1] : vector<2x32xf32> to vector<2xf32>
      %59 = vector.shape_cast %58 : vector<2xf32> to vector<2x1xf32>
      %cst_35 = arith.constant 3.200000e+01 : f32
      %60 = vector.broadcast %cst_35 : f32 to vector<2x1xf32>
      %61 = arith.divf %59, %60 : vector<2x1xf32>
      %62 = vector.broadcast %54 : vector<2x1xf32> to vector<2x32xf32>
      %63 = arith.subf %48, %62 : vector<2x32xf32>
      %cst_36 = arith.constant 9.99999974E-6 : f32
      %64 = vector.broadcast %cst_36 : f32 to vector<2x1xf32>
      %65 = arith.addf %61, %64 : vector<2x1xf32>
      %66 = math.rsqrt %65 : vector<2x1xf32>
      %67 = vector.broadcast %66 : vector<2x1xf32> to vector<2x32xf32>
      %68 = arith.mulf %63, %67 : vector<2x32xf32>
      %69 = vector.broadcast %49 : vector<1x32xf32> to vector<2x32xf32>
      %70 = arith.mulf %68, %69 : vector<2x32xf32>
      %71 = vector.broadcast %50 : vector<1x32xf32> to vector<2x32xf32>
      %72 = arith.addf %70, %71 : vector<2x32xf32>
      %cst_37 = arith.constant 0.000000e+00 : f32
      %73 = vector.broadcast %cst_37 : f32 to vector<2x32xf32>
      %74 = arith.maximumf %72, %73 : vector<2x32xf32>
      %c0_38 = arith.constant 0 : index
      %c0_39 = arith.constant 0 : index
      %75 = vector.load %arg10[%c0_38, %c0_39] : memref<2x32xf32, #tpu.memory_space<vmem>>, vector<2x32xf32>
      tpu.vector_store %arg10[%c0_38, %c0_39], %74 {strides = array<i32>} : memref<2x32xf32, #tpu.memory_space<vmem>>, vector<2x32xf32>,
    } else {
    }
    return
  }
  func.func @transform_0(%arg0: i32) -> (i32, i32) {
    %c0_i32 = arith.constant 0 : i32
    %c0_i32_0 = arith.constant 0 : i32
    return %c0_i32, %arg0 : i32, i32
  }
  func.func @transform_1(%arg0: i32) -> (i32, i32) {
    %c0_i32 = arith.constant 0 : i32
    %c0_i32_0 = arith.constant 0 : i32
    return %arg0, %c0_i32 : i32, i32
  }
  func.func @transform_2(%arg0: i32) -> (i32, i32) {
    %c0_i32 = arith.constant 0 : i32
    %c0_i32_0 = arith.constant 0 : i32
    %c0_i32_1 = arith.constant 0 : i32
    return %c0_i32, %c0_i32_0 : i32, i32
  }
  func.func @transform_3(%arg0: i32) -> (i32, i32) {
    %c0_i32 = arith.constant 0 : i32
    %c0_i32_0 = arith.constant 0 : i32
    %c0_i32_1 = arith.constant 0 : i32
    return %c0_i32, %c0_i32_0 : i32, i32
  }
  func.func @transform_4(%arg0: i32) -> (i32, i32) {
    %c0_i32 = arith.constant 0 : i32
    %c0_i32_0 = arith.constant 0 : i32
    %c0_i32_1 = arith.constant 0 : i32
    return %c0_i32, %c0_i32_0 : i32, i32
  }
  func.func @transform_5(%arg0: i32) -> (i32, i32) {
    %c0_i32 = arith.constant 0 : i32
    %c0_i32_0 = arith.constant 0 : i32
    %c0_i32_1 = arith.constant 0 : i32
    return %c0_i32, %c0_i32_0 : i32, i32
  }
  func.func @transform_6(%arg0: i32) -> (i32, i32) {
    %c0_i32 = arith.constant 0 : i32
    %c0_i32_0 = arith.constant 0 : i32
    %c0_i32_1 = arith.constant 0 : i32
    return %c0_i32, %c0_i32_0 : i32, i32
  }
  func.func @transform_7(%arg0: i32) -> (i32, i32) {
    %c0_i32 = arith.constant 0 : i32
    %c0_i32_0 = arith.constant 0 : i32
    %c0_i32_1 = arith.constant 0 : i32
    return %c0_i32, %c0_i32_0 : i32, i32
  }
  func.func @transform_8(%arg0: i32) -> (i32, i32) {
    %c0_i32 = arith.constant 0 : i32
    %c0_i32_0 = arith.constant 0 : i32
    %c0_i32_1 = arith.constant 0 : i32
    return %c0_i32, %c0_i32_0 : i32, i32
  }
  func.func @transform_9(%arg0: i32) -> (i32, i32) {
    %c0_i32 = arith.constant 0 : i32
    %c0_i32_0 = arith.constant 0 : i32
    %c0_i32_1 = arith.constant 0 : i32
    return %c0_i32, %c0_i32_0 : i32, i32
  }
}

</mosaic_0001>

<bundles_post_ra>
// kernel: _lambda_.5
= control target key start
LH: loop header
LB: loop body
LE: loop exit
PB: predicated region body
PF: predicated region fallthrough
CT: control target
= control target key end

     0   :  { %vm16_vm0 = vcmask 254976   ;;  %v879_v0 = vmov 0.0   ;;  %vm880_vm1 = vmmov 0   ;;  %vm39_vm2 = vcmask 261120   ;;  %s881_s14 = smov 32   ;;  %s882_s15 = smov 64   ;;  %s1097_s1 = inlined_call_operand.vmem [shape: bf16[32,128], index: 1, kind: input, shape index: {}]   ;;  %s1098_s0 = inlined_call_operand.vmem [shape: f32[8,2,128], index: 0, kind: input, shape index: {}]   ;;  %s1099_s2 = inlined_call_operand.vmem [shape: f32[8,2,32], index: 2, kind: output, shape index: {}]  }
   0x1   :  { %744 = vmatprep.subr.bf16.mxu0 %v879_v0  ;;  %v903_v1 = vld [vmem:[%s1097_s1] sm:$0xff]   ;;  %748 = vmatprep.mubr.msk.bf16.mxu0 %vm880_vm1, %v879_v0  ;;  %17 = vst.msk [vmem:[#allocation2] sm:$0x3] %vm16_vm0, %v879_v0  ;;  %18 = vst.msk [vmem:[#allocation3] sm:$0x3] %vm16_vm0, %v879_v0  ;;  %v918_v2 = vld [vmem:[%s1097_s1 + $0x8] sm:$0xff]  }
   0x2   :  { %752 = vmatprep.subr.bf16.mxu1 %v879_v0  ;;  %756 = vmatprep.mubr.msk.bf16.mxu1 %vm880_vm1, %v879_v0  ;;  %v25_v5 = vld [vmem:[%s1098_s0] sm:$0x3]  ;;  %v692_v28 = vld [vmem:[%s1098_s0 + $0x2] sm:$0x3]  ;;  %v696_v49 = vld [vmem:[%s1098_s0 + $0x4] sm:$0x3] }
   0x3   :  { %745 = vmatpush3.bf16.msra.mxu0 %v903_v1  ;;  %753 = vmatpush3.bf16.msra.mxu1 %v903_v1 }
   0x4   :  { %746 = vmatprep.subr.bf16.mxu0 %v879_v0  ;;  %754 = vmatprep.subr.bf16.mxu1 %v879_v0 }
   0x7   :  { %747 = vmatpush3.bf16.msra.mxu0 %v918_v2  ;;  %755 = vmatpush3.bf16.msra.mxu1 %v918_v2 }
   0x8   :  { %v23_v3 = vld [vmem:[#allocation2] sm:$0x3]  ;;  %760 = vmatprep.subr.bf16.mxu0 %v879_v0  ;;  %768 = vmatprep.subr.bf16.mxu1 %v879_v0  ;;  %v24_v12 = vld [vmem:[#allocation3] sm:$0x3] }
   0x9   :  { %v26_v4 = vpack.c.bf16 %v23_v3, %v23_v3 }
   0xb   :  { %749 = vmatmul.mubr.msk.bf16.vlgmr.msra.gmra.mrb[0].mxu0 %vm39_vm2, %v26_v4 }
   0xc   :  { %761 = vmatpush3.bf16.msra.mxu0 %v903_v1  ;;  %764 = vmatprep.mubr.msk.bf16.mxu0 %vm880_vm1, %v879_v0 }
   0xd   :  { %762 = vmatprep.subr.bf16.mxu0 %v879_v0 }
  0x10   :  { %763 = vmatpush3.bf16.msra.mxu0 %v918_v2 }
  0x11   :  { %776 = vmatprep.subr.bf16.mxu0 %v879_v0 }
  0xde   :  { %v77_v6 = vpop.f32.mrb[0].mxu0 }
  0xdf   :  { %v83_v7 = vadd.f32 %v77_v6, %v25_v5  ;;  %v750_v8 = vpop.f32.mrb[1].mxu0 }
  0xe0   :  { %v80_v9 = vpop.f32.mrb[2].mxu0 }
  0xe1   :  { %815 = vtanh.f32 %v83_v7  ;;  %v751_v10 = vpop.f32.mrb[3].mxu0  ;;  %v691_v13 = vmul.f32 -1.442695, %v83_v7  ;;  %v700_v9 = vld [vmem:[%s1098_s0 + $0x6] sm:$0x3] }
  0xe3   :  { %817 = vpow2.f32 %v691_v13 }
  0xeb   :  { %v816_v11 = vpop.eup %815 }
  0xec   :  { %97 = vrot.lane.b32.xlu0 %v816_v11, %s881_s14 }
  0xed   :  { %v818_v14 = vpop.eup %817 }
  0xee   :  { %v87_v15 = vadd.f32 1.0, %v818_v14 }
  0xf0   :  { %92 = vrot.lane.b32.xlu0 %v24_v12, %s881_s14  ;;  %819 = vrcp.f32 %v87_v15 }
  0xfa   :  { %v820_v16 = vpop.eup %819 }
 0x15e   :  { %v98_v17 = vpop.permute.xlu0 %97 }
 0x15f   :  { %v100_v18 = vmul.f32 %v820_v16, %v98_v17 }
 0x161   :  { %102 = vrot.lane.b32.xlu1 %v100_v18, %s881_s14 }
 0x162   :  { %v93_v19 = vpop.permute.xlu0 %92 }
 0x163   :  { %v95_v20 = vmul.f32 %v820_v16, %v93_v19 }
 0x1d3   :  { %v103_v21 = vpop.permute.xlu1 %102 }
 0x1d4   :  { %v105_v22 = vadd.f32 %v103_v21, %v95_v20 }
 0x1d6   :  { %821 = vtanh.f32 %v105_v22 }
 0x1e0   :  { %v822_v23 = vpop.eup %821 }
 0x1e1   :  { %108 = vrot.lane.b32.xlu1 %v822_v23, %s881_s14 }
 0x253   :  { %v109_v24 = vpop.permute.xlu1 %108 }
 0x254   :  { %v941_v25 = vmul.f32 %v820_v16, %v109_v24 }
 0x256   :  { %v120_v26 = vpack.c.bf16 %v941_v25, %v941_v25 }
 0x258   :  { %122 = vrot.lane.b32.xlu0 %v120_v26, %s882_s15 }
 0x2ca   :  { %v123_v27 = vpop.permute.xlu0 %122 }
 0x2cb   :  { %757 = vmatmul.mubr.msk.bf16.vlgmr.msra.gmra.mrb[0].mxu1 %vm39_vm2, %v123_v27 }
 0x2cc   :  { %769 = vmatpush3.bf16.msra.mxu1 %v903_v1  ;;  %772 = vmatprep.mubr.msk.bf16.mxu1 %vm880_vm1, %v879_v0 }
 0x2cd   :  { %770 = vmatprep.subr.bf16.mxu1 %v879_v0 }
 0x2d0   :  { %771 = vmatpush3.bf16.msra.mxu1 %v918_v2 }
 0x2d1   :  { %784 = vmatprep.subr.bf16.mxu1 %v879_v0 }
 0x39e   :  { %v161_v29 = vpop.f32.mrb[0].mxu1 }
 0x39f   :  { %v167_v30 = vadd.f32 %v692_v28, %v161_v29  ;;  %v758_v31 = vpop.f32.mrb[1].mxu1 }
 0x3a0   :  { %v164_v32 = vpop.f32.mrb[2].mxu1  ;;  %v704_v31 = vld [vmem:[%s1098_s0 + $0x8] sm:$0x3] }
 0x3a1   :  { %823 = vtanh.f32 %v167_v30  ;;  %v759_v33 = vpop.f32.mrb[3].mxu1  ;;  %v694_v35 = vmul.f32 -1.442695, %v167_v30 }
 0x3a3   :  { %825 = vpow2.f32 %v694_v35 }
 0x3ab   :  { %v824_v34 = vpop.eup %823 }
 0x3ac   :  { %177 = vrot.lane.b32.xlu1 %v824_v34, %s881_s14 }
 0x3ad   :  { %v826_v36 = vpop.eup %825 }
 0x3ae   :  { %v171_v37 = vadd.f32 1.0, %v826_v36 }
 0x3b0   :  { %827 = vrcp.f32 %v171_v37 }
 0x3ba   :  { %v828_v38 = vpop.eup %827 }
 0x3bb   :  { %v175_v41 = vmul.f32 %v828_v38, %v105_v22 }
 0x41e   :  { %v178_v39 = vpop.permute.xlu1 %177 }
 0x41f   :  { %v180_v40 = vmul.f32 %v828_v38, %v178_v39 }
 0x421   :  { %182 = vrot.lane.b32.xlu0 %v180_v40, %s881_s14 }
 0x493   :  { %v183_v42 = vpop.permute.xlu0 %182 }
 0x494   :  { %v185_v43 = vadd.f32 %v183_v42, %v175_v41 }
 0x496   :  { %829 = vtanh.f32 %v185_v43 }
 0x4a0   :  { %v830_v44 = vpop.eup %829 }
 0x4a1   :  { %188 = vrot.lane.b32.xlu1 %v830_v44, %s881_s14 }
 0x513   :  { %v189_v45 = vpop.permute.xlu1 %188 }
 0x514   :  { %v959_v46 = vmul.f32 %v828_v38, %v189_v45 }
 0x516   :  { %v200_v47 = vpack.c.bf16 %v959_v46, %v959_v46 }
 0x518   :  { %202 = vrot.lane.b32.xlu0 %v200_v47, %s882_s15 }
 0x58a   :  { %v203_v48 = vpop.permute.xlu0 %202 }
 0x58b   :  { %765 = vmatmul.mubr.msk.bf16.vlgmr.msra.gmra.mrb[4].mxu0 %vm39_vm2, %v203_v48 }
 0x58c   :  { %777 = vmatpush3.bf16.msra.mxu0 %v903_v1  ;;  %780 = vmatprep.mubr.msk.bf16.mxu0 %vm880_vm1, %v879_v0 }
 0x58d   :  { %778 = vmatprep.subr.bf16.mxu0 %v879_v0 }
 0x590   :  { %779 = vmatpush3.bf16.msra.mxu0 %v918_v2 }
 0x591   :  { %792 = vmatprep.subr.bf16.mxu0 %v879_v0 }
 0x65e   :  { %v241_v50 = vpop.f32.mrb[4].mxu0 }
 0x65f   :  { %v247_v51 = vadd.f32 %v696_v49, %v241_v50  ;;  %v766_v52 = vpop.f32.mrb[5].mxu0 }
 0x660   :  { %v244_v53 = vpop.f32.mrb[6].mxu0 }
 0x661   :  { %831 = vtanh.f32 %v247_v51  ;;  %v767_v54 = vpop.f32.mrb[7].mxu0  ;;  %v698_v56 = vmul.f32 -1.442695, %v247_v51  ;;  %v708_v53 = vld [vmem:[%s1098_s0 + $0xa] sm:$0x3] }
 0x663   :  { %833 = vpow2.f32 %v698_v56 }
 0x66b   :  { %v832_v55 = vpop.eup %831 }
 0x66c   :  { %257 = vrot.lane.b32.xlu1 %v832_v55, %s881_s14 }
 0x66d   :  { %v834_v57 = vpop.eup %833 }
 0x66e   :  { %v251_v58 = vadd.f32 1.0, %v834_v57 }
 0x670   :  { %835 = vrcp.f32 %v251_v58 }
 0x67a   :  { %v836_v59 = vpop.eup %835 }
 0x67b   :  { %v255_v62 = vmul.f32 %v836_v59, %v185_v43 }
 0x6de   :  { %v258_v60 = vpop.permute.xlu1 %257 }
 0x6df   :  { %v260_v61 = vmul.f32 %v836_v59, %v258_v60 }
 0x6e1   :  { %262 = vrot.lane.b32.xlu0 %v260_v61, %s881_s14 }
 0x753   :  { %v263_v63 = vpop.permute.xlu0 %262 }
 0x754   :  { %v265_v3 = vadd.f32 %v263_v63, %v255_v62 }
 0x756   :  { %837 = vtanh.f32 %v265_v3 }
 0x760   :  { %v838_v4 = vpop.eup %837 }
 0x761   :  { %268 = vrot.lane.b32.xlu1 %v838_v4, %s881_s14 }
 0x7d3   :  { %v269_v5 = vpop.permute.xlu1 %268 }
 0x7d4   :  { %v977_v6 = vmul.f32 %v836_v59, %v269_v5 }
 0x7d6   :  { %v280_v7 = vpack.c.bf16 %v977_v6, %v977_v6 }
 0x7d8   :  { %282 = vrot.lane.b32.xlu0 %v280_v7, %s882_s15 }
 0x84a   :  { %v283_v8 = vpop.permute.xlu0 %282 }
 0x84b   :  { %773 = vmatmul.mubr.msk.bf16.vlgmr.msra.gmra.mrb[4].mxu1 %vm39_vm2, %v283_v8 }
 0x84c   :  { %785 = vmatpush3.bf16.msra.mxu1 %v903_v1  ;;  %788 = vmatprep.mubr.msk.bf16.mxu1 %vm880_vm1, %v879_v0 }
 0x84d   :  { %786 = vmatprep.subr.bf16.mxu1 %v879_v0 }
 0x850   :  { %787 = vmatpush3.bf16.msra.mxu1 %v918_v2 }
 0x851   :  { %800 = vmatprep.subr.bf16.mxu1 %v879_v0 }
 0x91e   :  { %v321_v10 = vpop.f32.mrb[4].mxu1 }
 0x91f   :  { %v327_v11 = vadd.f32 %v700_v9, %v321_v10  ;;  %v774_v12 = vpop.f32.mrb[5].mxu1 }
 0x920   :  { %v324_v13 = vpop.f32.mrb[6].mxu1 }
 0x921   :  { %839 = vtanh.f32 %v327_v11  ;;  %v775_v14 = vpop.f32.mrb[7].mxu1  ;;  %v702_v16 = vmul.f32 -1.442695, %v327_v11  ;;  %v712_v11 = vld [vmem:[%s1098_s0 + $0xc] sm:$0x3] }
 0x923   :  { %841 = vpow2.f32 %v702_v16 }
 0x92b   :  { %v840_v15 = vpop.eup %839 }
 0x92c   :  { %337 = vrot.lane.b32.xlu1 %v840_v15, %s881_s14 }
 0x92d   :  { %v842_v17 = vpop.eup %841 }
 0x92e   :  { %v331_v18 = vadd.f32 1.0, %v842_v17 }
 0x930   :  { %843 = vrcp.f32 %v331_v18 }
 0x93a   :  { %v844_v19 = vpop.eup %843 }
 0x93b   :  { %v335_v22 = vmul.f32 %v844_v19, %v265_v3 }
 0x99e   :  { %v338_v20 = vpop.permute.xlu1 %337 }
 0x99f   :  { %v340_v21 = vmul.f32 %v844_v19, %v338_v20 }
 0x9a1   :  { %342 = vrot.lane.b32.xlu0 %v340_v21, %s881_s14 }
 0xa13   :  { %v343_v23 = vpop.permute.xlu0 %342 }
 0xa14   :  { %v345_v24 = vadd.f32 %v343_v23, %v335_v22 }
 0xa16   :  { %845 = vtanh.f32 %v345_v24 }
 0xa20   :  { %v846_v26 = vpop.eup %845 }
 0xa21   :  { %348 = vrot.lane.b32.xlu1 %v846_v26, %s881_s14 }
 0xa93   :  { %v349_v27 = vpop.permute.xlu1 %348 }
 0xa94   :  { %v995_v28 = vmul.f32 %v844_v19, %v349_v27 }
 0xa96   :  { %v360_v29 = vpack.c.bf16 %v995_v28, %v995_v28 }
 0xa98   :  { %362 = vrot.lane.b32.xlu0 %v360_v29, %s882_s15 }
 0xb0a   :  { %v363_v30 = vpop.permute.xlu0 %362 }
 0xb0b   :  { %781 = vmatmul.mubr.msk.bf16.vlgmr.msra.gmra.mrb[8].mxu0 %vm39_vm2, %v363_v30 }
 0xb0c   :  { %793 = vmatpush3.bf16.msra.mxu0 %v903_v1  ;;  %796 = vmatprep.mubr.msk.bf16.mxu0 %vm880_vm1, %v879_v0 }
 0xb0d   :  { %794 = vmatprep.subr.bf16.mxu0 %v879_v0 }
 0xb10   :  { %795 = vmatpush3.bf16.msra.mxu0 %v918_v2 }
 0xbde   :  { %v401_v32 = vpop.f32.mrb[8].mxu0 }
 0xbdf   :  { %v407_v33 = vadd.f32 %v704_v31, %v401_v32  ;;  %v782_v34 = vpop.f32.mrb[9].mxu0 }
 0xbe0   :  { %v404_v35 = vpop.f32.mrb[10].mxu0  ;;  %v716_v34 = vld [vmem:[%s1098_s0 + $0xe] sm:$0x3]  ;;  %s883_s0 = smov 96  }
 0xbe1   :  { %847 = vtanh.f32 %v407_v33  ;;  %v783_v36 = vpop.f32.mrb[11].mxu0  ;;  %v706_v38 = vmul.f32 -1.442695, %v407_v33 }
 0xbe3   :  { %849 = vpow2.f32 %v706_v38 }
 0xbeb   :  { %v848_v37 = vpop.eup %847 }
 0xbec   :  { %417 = vrot.lane.b32.xlu1 %v848_v37, %s881_s14 }
 0xbed   :  { %v850_v39 = vpop.eup %849 }
 0xbee   :  { %v411_v40 = vadd.f32 1.0, %v850_v39 }
 0xbf0   :  { %851 = vrcp.f32 %v411_v40 }
 0xbfa   :  { %v852_v41 = vpop.eup %851 }
 0xbfb   :  { %v415_v44 = vmul.f32 %v852_v41, %v345_v24 }
 0xc5e   :  { %v418_v42 = vpop.permute.xlu1 %417 }
 0xc5f   :  { %v420_v43 = vmul.f32 %v852_v41, %v418_v42 }
 0xc61   :  { %422 = vrot.lane.b32.xlu0 %v420_v43, %s881_s14 }
 0xcd3   :  { %v423_v45 = vpop.permute.xlu0 %422 }
 0xcd4   :  { %v425_v47 = vadd.f32 %v423_v45, %v415_v44 }
 0xcd6   :  { %853 = vtanh.f32 %v425_v47 }
 0xce0   :  { %v854_v48 = vpop.eup %853 }
 0xce1   :  { %428 = vrot.lane.b32.xlu1 %v854_v48, %s881_s14 }
 0xd53   :  { %v429_v49 = vpop.permute.xlu1 %428 }
 0xd54   :  { %v1012_v50 = vmul.f32 %v852_v41, %v429_v49 }
 0xd56   :  { %v440_v51 = vpack.c.bf16 %v1012_v50, %v1012_v50 }
 0xd58   :  { %442 = vrot.lane.b32.xlu0 %v440_v51, %s882_s15 }
 0xdca   :  { %v443_v52 = vpop.permute.xlu0 %442 }
 0xdcb   :  { %789 = vmatmul.mubr.msk.bf16.vlgmr.msra.gmra.mrb[8].mxu1 %vm39_vm2, %v443_v52 }
 0xdcc   :  { %801 = vmatpush3.bf16.msra.mxu1 %v903_v1  ;;  %804 = vmatprep.mubr.msk.bf16.mxu1 %vm880_vm1, %v879_v0 }
 0xdcd   :  { %802 = vmatprep.subr.bf16.mxu1 %v879_v0 }
 0xdd0   :  { %803 = vmatpush3.bf16.msra.mxu1 %v918_v2 }
 0xe9e   :  { %v481_v54 = vpop.f32.mrb[8].mxu1 }
 0xe9f   :  { %v487_v55 = vadd.f32 %v708_v53, %v481_v54  ;;  %v790_v56 = vpop.f32.mrb[9].mxu1 }
 0xea0   :  { %v484_v57 = vpop.f32.mrb[10].mxu1 }
 0xea1   :  { %855 = vtanh.f32 %v487_v55  ;;  %v791_v58 = vpop.f32.mrb[11].mxu1  ;;  %v710_v1 = vmul.f32 -1.442695, %v487_v55 }
 0xea3   :  { %857 = vpow2.f32 %v710_v1 }
 0xeab   :  { %v856_v59 = vpop.eup %855 }
 0xeac   :  { %497 = vrot.lane.b32.xlu1 %v856_v59, %s881_s14 }
 0xead   :  { %v858_v60 = vpop.eup %857 }
 0xeae   :  { %v491_v61 = vadd.f32 1.0, %v858_v60 }
 0xeb0   :  { %859 = vrcp.f32 %v491_v61 }
 0xeba   :  { %v860_v0 = vpop.eup %859 }
 0xebb   :  { %v495_v63 = vmul.f32 %v860_v0, %v425_v47 }
 0xf1e   :  { %v498_v2 = vpop.permute.xlu1 %497 }
 0xf1f   :  { %v500_v62 = vmul.f32 %v860_v0, %v498_v2 }
 0xf21   :  { %502 = vrot.lane.b32.xlu0 %v500_v62, %s881_s14 }
 0xf93   :  { %v503_v3 = vpop.permute.xlu0 %502 }
 0xf94   :  { %v505_v4 = vadd.f32 %v503_v3, %v495_v63 }
 0xf96   :  { %861 = vtanh.f32 %v505_v4 }
 0xfa0   :  { %v862_v5 = vpop.eup %861 }
 0xfa1   :  { %508 = vrot.lane.b32.xlu1 %v862_v5, %s881_s14 }
0x1013   :  { %v509_v7 = vpop.permute.xlu1 %508 }
0x1014   :  { %v1029_v8 = vmul.f32 %v860_v0, %v509_v7 }
0x1016   :  { %v520_v9 = vpack.c.bf16 %v1029_v8, %v1029_v8 }
0x1018   :  { %522 = vrot.lane.b32.xlu0 %v520_v9, %s882_s15 }
0x108a   :  { %v523_v10 = vpop.permute.xlu0 %522 }
0x108b   :  { %797 = vmatmul.mubr.msk.bf16.vlgmr.msra.gmra.mrb[12].mxu0 %vm39_vm2, %v523_v10 }
0x115e   :  { %v561_v12 = vpop.f32.mrb[12].mxu0 }
0x115f   :  { %v567_v13 = vadd.f32 %v712_v11, %v561_v12  ;;  %v798_v14 = vpop.f32.mrb[13].mxu0 }
0x1160   :  { %v564_v15 = vpop.f32.mrb[14].mxu0 }
0x1161   :  { %863 = vtanh.f32 %v567_v13  ;;  %v799_v16 = vpop.f32.mrb[15].mxu0  ;;  %v714_v18 = vmul.f32 -1.442695, %v567_v13 }
0x1163   :  { %865 = vpow2.f32 %v714_v18 }
0x116b   :  { %v864_v17 = vpop.eup %863 }
0x116c   :  { %577 = vrot.lane.b32.xlu1 %v864_v17, %s881_s14 }
0x116d   :  { %v866_v19 = vpop.eup %865 }
0x116e   :  { %v571_v20 = vadd.f32 1.0, %v866_v19 }
0x1170   :  { %867 = vrcp.f32 %v571_v20 }
0x117a   :  { %v868_v21 = vpop.eup %867 }
0x117b   :  { %v575_v24 = vmul.f32 %v868_v21, %v505_v4 }
0x11de   :  { %v578_v22 = vpop.permute.xlu1 %577 }
0x11df   :  { %v580_v23 = vmul.f32 %v868_v21, %v578_v22 }
0x11e1   :  { %582 = vrot.lane.b32.xlu0 %v580_v23, %s881_s14 }
0x1253   :  { %v583_v26 = vpop.permute.xlu0 %582 }
0x1254   :  { %v585_v27 = vadd.f32 %v583_v26, %v575_v24 }
0x1256   :  { %869 = vtanh.f32 %v585_v27 }
0x1260   :  { %v870_v29 = vpop.eup %869 }
0x1261   :  { %588 = vrot.lane.b32.xlu1 %v870_v29, %s881_s14 }
0x12d3   :  { %v589_v30 = vpop.permute.xlu1 %588 }
0x12d4   :  { %v591_v31 = vmul.f32 %v868_v21, %v589_v30 }
0x12d6   :  { %v600_v32 = vpack.c.bf16 %v591_v31, %v591_v31 }
0x12d8   :  { %602 = vrot.lane.b32.xlu0 %v600_v32, %s882_s15 }
0x134a   :  { %v603_v33 = vpop.permute.xlu0 %602 }
0x134b   :  { %805 = vmatmul.mubr.msk.bf16.vlgmr.msra.gmra.mrb[12].mxu1 %vm39_vm2, %v603_v33 }
0x141e   :  { %v641_v35 = vpop.f32.mrb[12].mxu1 }
0x141f   :  { %v647_v36 = vadd.f32 %v716_v34, %v641_v35  ;;  %v806_v37 = vpop.f32.mrb[13].mxu1 }
0x1420   :  { %v644_v38 = vpop.f32.mrb[14].mxu1 }
0x1421   :  { %871 = vtanh.f32 %v647_v36  ;;  %v807_v39 = vpop.f32.mrb[15].mxu1  ;;  %v718_v41 = vmul.f32 -1.442695, %v647_v36 }
0x1423   :  { %873 = vpow2.f32 %v718_v41 }
0x142b   :  { %v872_v40 = vpop.eup %871 }
0x142c   :  { %657 = vrot.lane.b32.xlu1 %v872_v40, %s881_s14 }
0x142d   :  { %v874_v42 = vpop.eup %873 }
0x142e   :  { %v651_v43 = vadd.f32 1.0, %v874_v42 }
0x1430   :  { %875 = vrcp.f32 %v651_v43 }
0x143a   :  { %v876_v44 = vpop.eup %875 }
0x143b   :  { %v655_v48 = vmul.f32 %v876_v44, %v585_v27 }
0x149e   :  { %v658_v45 = vpop.permute.xlu1 %657 }
0x149f   :  { %v660_v47 = vmul.f32 %v876_v44, %v658_v45 }
0x14a1   :  { %662 = vrot.lane.b32.xlu0 %v660_v47, %s881_s14 }
0x14a5   :  { %113 = vrot.lane.b32.xlu0 %v941_v25, %s882_s15 }
0x14a9   :  { %273 = vrot.lane.b32.xlu0 %v977_v6, %s882_s15 }
0x14ad   :  { %433 = vrot.lane.b32.xlu0 %v1012_v50, %s882_s15 }
0x14b1   :  { %593 = vrot.lane.b32.xlu0 %v591_v31, %s882_s15 }
0x1513   :  { %v663_v49 = vpop.permute.xlu0 %662 }
0x1514   :  { %v665_v51 = vadd.f32 %v663_v49, %v655_v48 }
0x1516   :  { %877 = vtanh.f32 %v665_v51  ;;  %680 = vrot.lane.b32.xlu0 %v665_v51, %s883_s0 }
0x1517   :  { %v114_v52 = vpop.permute.xlu0 %113 }
0x1518   :  { %117 = vst.msk [vmem:[%s1099_s2] sm:$0x3] %vm16_vm0, %v114_v52 }
0x151b   :  { %v274_v25 = vpop.permute.xlu0 %273 }
0x151c   :  { %699 = vst.msk [vmem:[%s1099_s2 + $0x4] sm:$0x3] %vm16_vm0, %v274_v25 }
0x151f   :  { %v434_v6 = vpop.permute.xlu0 %433 }
0x1520   :  { %v878_v50 = vpop.eup %877  ;;  %707 = vst.msk [vmem:[%s1099_s2 + $0x8] sm:$0x3] %vm16_vm0, %v434_v6 }
0x1521   :  { %668 = vrot.lane.b32.xlu1 %v878_v50, %s881_s14 }
0x1523   :  { %v594_v53 = vpop.permute.xlu0 %593 }
0x1524   :  { %715 = vst.msk [vmem:[%s1099_s2 + $0xc] sm:$0x3] %vm16_vm0, %v594_v53 }
0x1525   :  { %193 = vrot.lane.b32.xlu1 %v959_v46, %s882_s15 }
0x1529   :  { %353 = vrot.lane.b32.xlu1 %v995_v28, %s882_s15 }
0x152d   :  { %513 = vrot.lane.b32.xlu1 %v1029_v8, %s882_s15 }
0x1588   :  { %v681_v54 = vpop.permute.xlu0 %680 }
0x1589   :  { %683 = vst.msk [vmem:[#allocation3] sm:$0x3] %vm16_vm0, %v681_v54 }
0x1593   :  { %v669_v55 = vpop.permute.xlu1 %668 }
0x1594   :  { %v671_v56 = vmul.f32 %v876_v44, %v669_v55 }
0x1596   :  { %673 = vrot.lane.b32.xlu1 %v671_v56, %s882_s15 }
0x1597   :  { %v194_v57 = vpop.permute.xlu1 %193 }
0x1598   :  { %695 = vst.msk [vmem:[%s1099_s2 + $0x2] sm:$0x3] %vm16_vm0, %v194_v57 }
0x159b   :  { %v354_v46 = vpop.permute.xlu1 %353 }
0x159c   :  { %703 = vst.msk [vmem:[%s1099_s2 + $0x6] sm:$0x3] %vm16_vm0, %v354_v46 }
0x159f   :  { %v514_v28 = vpop.permute.xlu1 %513 }
0x15a0   :  { %711 = vst.msk [vmem:[%s1099_s2 + $0xa] sm:$0x3] %vm16_vm0, %v514_v28 }
0x1608   :  { %v674_v58 = vpop.permute.xlu1 %673 }
0x1609   :  { %719 = vst.msk [vmem:[%s1099_s2 + $0xe] sm:$0x3] %vm16_vm0, %v674_v58  ;;  %678 = vst.msk [vmem:[#allocation2] sm:$0x3] %vm16_vm0, %v674_v58 }

// kernel: _lambda_.4
= control target key start
LH: loop header
LB: loop body
LE: loop exit
PB: predicated region body
PF: predicated region fallthrough
CT: control target
= control target key end

     0   :  { %v398_v0 = vmov 0.0   ;;  %vm399_vm0 = vmmov 0   ;;  %vm57_vm1 = vcmask 130048   ;;  %vm104_vm2 = vcmask 261120   ;;  %s526_s1 = inlined_call_operand.vmem [shape: bf16[16,32], index: 1, kind: input, shape index: {}]   ;;  %s527_s0 = inlined_call_operand.vmem [shape: f32[16,16], index: 0, kind: input, shape index: {}]   ;;  %s528_s2 = inlined_call_operand.vmem [shape: f32[1,32], index: 2, kind: input, shape index: {}]   ;;  %s529_s5 = inlined_call_operand.vmem [shape: bf16[32,32], index: 5, kind: input, shape index: {}]   ;;  %s530_s3 = inlined_call_operand.vmem [shape: f32[1,32], index: 3, kind: input, shape index: {}, may-alias: {3,7}]   ;;  %s531_s4 = inlined_call_operand.vmem [shape: f32[1,32], index: 4, kind: input, shape index: {}, may-alias: {4,8}]   ;;  %s532_s6 = inlined_call_operand.vmem [shape: f32[1,32], index: 6, kind: input, shape index: {}]   ;;  %s533_s9 = inlined_call_operand.vmem [shape: bf16[32,128], index: 9, kind: input, shape index: {}]   ;;  %s534_s7 = inlined_call_operand.vmem [shape: f32[1,32], index: 7, kind: input, shape index: {}, may-alias: {3,7}]   ;;  %s535_s8 = inlined_call_operand.vmem [shape: f32[1,32], index: 8, kind: input, shape index: {}, may-alias: {4,8}]   ;;  %s536_s10 = inlined_call_operand.vmem [shape: f32[1,128], index: 10, kind: input, shape index: {}]   ;;  %s537_s11 = inlined_call_operand.vmem [shape: f32[16,128], index: 11, kind: output, shape index: {}]  }
   0x1   :  { %361 = vmatprep.subr.bf16.mxu0 %v398_v0  ;;  %v385_v1 = vld [vmem:[%s526_s1] sm:$0xff]   ;;  %363 = vmatprep.mubr.msk.bf16.mxu0 %vm399_vm0, %v398_v0  ;;  %v40_v3 = vld [vmem:[%s527_s0 + $0x8] sm:$0xff] }
   0x2   :  { %v39_v2 = vld [vmem:[%s527_s0] sm:$0xff]  ;;  %367 = vmatprep.subr.bf16.mxu1 %v398_v0  ;;  %371 = vmatprep.mubr.msk.bf16.mxu1 %vm399_vm0, %v398_v0  ;;  %v387_v25 = vld [vmem:[%s529_s5 + $0x8] sm:$0xff]  }
   0x3   :  { %362 = vmatpush3.bf16.msra.mxu0 %v385_v1  ;;  %v43_v4 = vpack.c.bf16 %v40_v3, %v39_v2  ;;  %v338_v5 = vld [vmem:[%s528_s2] ss:$0 sm:$0xff]  ;;  %v389_v2 = vld [vmem:[%s533_s9 + $0x8] sm:$0xff]  }
   0x4   :  { %375 = vmatprep.subr.bf16.mxu0 %v398_v0  ;;  %v386_v24 = vld [vmem:[%s529_s5] sm:$0xff]  }
   0x5   :  { %368 = vmatpush3.bf16.msra.mxu1 %v386_v24  ;;  %v341_v33 = vld [vmem:[%s530_s3] ss:$0 sm:$0xff] }
   0x6   :  { %364 = vmatmul.mubr.msk.bf16.vlgmr.msra.gmra.mrb[0].mxu0 %vm57_vm1, %v43_v4  ;;  %369 = vmatprep.subr.bf16.mxu1 %v398_v0  ;;  %v342_v37 = vld [vmem:[%s531_s4] ss:$0 sm:$0xff] }
   0x7   :  { %379 = vmatprep.mubr.msk.bf16.mxu0 %vm399_vm0, %v398_v0  ;;  %v343_v45 = vld [vmem:[%s532_s6] ss:$0 sm:$0xff] }
   0x8   :  { %v388_v1 = vld [vmem:[%s533_s9] sm:$0xff]  }
   0x9   :  { %370 = vmatpush3.bf16.msra.mxu1 %v387_v25  ;;  %376 = vmatpush3.bf16.msra.mxu0 %v388_v1 }
   0xa   :  { %377 = vmatprep.subr.bf16.mxu0 %v398_v0  ;;  %v348_v0 = vld [vmem:[%s535_s8] ss:$0 sm:$0xff] }
   0xd   :  { %378 = vmatpush3.bf16.msra.mxu0 %v389_v2 }
  0xd9   :  { %v95_v6 = vpop.f32.mrb[0].mxu0 }
  0xda   :  { %v96_v7 = vadd.f32 %v338_v5, %v95_v6  ;;  %v365_v8 = vpop.f32.mrb[1].mxu0 }
  0xdb   :  { %v98_v9 = vpop.f32.mrb[2].mxu0 }
  0xdc   :  { %v99_v10 = vadd.f32 %v338_v5, %v98_v9  ;;  %v366_v11 = vpop.f32.mrb[3].mxu0  ;;  %v105_v12 = vsel %vm104_vm2, %v96_v7, 0.0 }
  0xdd   :  { %106 = vadd.xlane.f32.xlu0 %v105_v12 }
  0xde   :  { %v108_v13 = vsel %vm104_vm2, %v99_v10, 0.0 }
  0xe1   :  { %109 = vadd.xlane.f32.xlu0 %v108_v13 }
 0x16a   :  { %v107_v14 = vpop.xlane.xlu0 %106 }
 0x16b   :  { %v112_v15 = vmul.f32 0.03125, %v107_v14 }
 0x16d   :  { %v114_v16 = vsub.f32 %v96_v7, %v112_v15 }
 0x16e   :  { %v110_v17 = vpop.xlane.xlu0 %109 }
 0x16f   :  { %v113_v18 = vmul.f32 0.03125, %v110_v17  ;;  %v116_v19 = vmul.f32 %v114_v16, %v114_v16 }
 0x171   :  { %v115_v20 = vsub.f32 %v99_v10, %v113_v18  ;;  %v118_v21 = vsel %vm104_vm2, %v116_v19, 0.0  ;;  %v347_v10 = vld [vmem:[%s534_s7] ss:$0 sm:$0xff] }
 0x172   :  { %119 = vadd.xlane.f32.xlu1 %v118_v21  ;;  %v349_v21 = vld [vmem:[%s536_s10] ss:$0 sm:$0xff] }
 0x173   :  { %v117_v22 = vmul.f32 %v115_v20, %v115_v20 }
 0x175   :  { %v121_v23 = vsel %vm104_vm2, %v117_v22, 0.0 }
 0x176   :  { %122 = vadd.xlane.f32.xlu1 %v121_v23 }
 0x1ff   :  { %v120_v26 = vpop.xlane.xlu1 %119 }
 0x200   :  { %v124_v27 = vmul.f32 0.03125, %v120_v26 }
 0x202   :  { %v126_v28 = vadd.f32 1e-05, %v124_v27 }
 0x203   :  { %v123_v29 = vpop.xlane.xlu1 %122 }
 0x204   :  { %390 = vrsqrt.f32 %v126_v28  ;;  %v125_v30 = vmul.f32 0.03125, %v123_v29 }
 0x206   :  { %v127_v31 = vadd.f32 1e-05, %v125_v30 }
 0x208   :  { %392 = vrsqrt.f32 %v127_v31 }
 0x20e   :  { %v391_v32 = vpop.eup %390 }
 0x20f   :  { %v130_v34 = vmul.f32 %v391_v32, %v114_v16 }
 0x211   :  { %v138_v35 = vmul.f32 %v341_v33, %v130_v34 }
 0x212   :  { %v393_v36 = vpop.eup %392 }
 0x213   :  { %v131_v38 = vmul.f32 %v393_v36, %v115_v20  ;;  %v146_v40 = vadd.f32 %v342_v37, %v138_v35 }
 0x215   :  { %v139_v39 = vmul.f32 %v341_v33, %v131_v38  ;;  %v148_v42 = vmax.f32 %v146_v40, 0.0 }
 0x217   :  { %v147_v41 = vadd.f32 %v342_v37, %v139_v39 }
 0x219   :  { %v149_v43 = vmax.f32 %v147_v41, 0.0 }
 0x21b   :  { %v154_v44 = vpack.c.bf16 %v149_v43, %v148_v42 }
 0x21d   :  { %372 = vmatmul.mubr.msk.bf16.vlgmr.msra.gmra.mrb[0].mxu1 %vm104_vm2, %v154_v44 }
 0x2f0   :  { %v211_v46 = vpop.f32.mrb[0].mxu1 }
 0x2f1   :  { %v212_v47 = vadd.f32 %v343_v45, %v211_v46  ;;  %v373_v48 = vpop.f32.mrb[1].mxu1 }
 0x2f2   :  { %v214_v49 = vpop.f32.mrb[2].mxu1 }
 0x2f3   :  { %v215_v50 = vadd.f32 %v343_v45, %v214_v49  ;;  %v374_v51 = vpop.f32.mrb[3].mxu1  ;;  %v220_v52 = vsel %vm104_vm2, %v212_v47, 0.0 }
 0x2f4   :  { %221 = vadd.xlane.f32.xlu0 %v220_v52 }
 0x2f5   :  { %v223_v53 = vsel %vm104_vm2, %v215_v50, 0.0 }
 0x2f6   :  { %224 = vadd.xlane.f32.xlu1 %v223_v53 }
 0x381   :  { %v222_v54 = vpop.xlane.xlu0 %221 }
 0x382   :  { %v226_v55 = vmul.f32 0.03125, %v222_v54 }
 0x383   :  { %v225_v56 = vpop.xlane.xlu1 %224 }
 0x384   :  { %v228_v57 = vsub.f32 %v212_v47, %v226_v55  ;;  %v227_v58 = vmul.f32 0.03125, %v225_v56 }
 0x386   :  { %v229_v59 = vsub.f32 %v215_v50, %v227_v58  ;;  %v230_v60 = vmul.f32 %v228_v57, %v228_v57 }
 0x388   :  { %v232_v61 = vsel %vm104_vm2, %v230_v60, 0.0  ;;  %v231_v62 = vmul.f32 %v229_v59, %v229_v59 }
 0x389   :  { %233 = vadd.xlane.f32.xlu0 %v232_v61 }
 0x38a   :  { %v235_v63 = vsel %vm104_vm2, %v231_v62, 0.0 }
 0x38b   :  { %236 = vadd.xlane.f32.xlu1 %v235_v63 }
 0x416   :  { %v234_v3 = vpop.xlane.xlu0 %233 }
 0x417   :  { %v238_v4 = vmul.f32 0.03125, %v234_v3 }
 0x418   :  { %v237_v5 = vpop.xlane.xlu1 %236 }
 0x419   :  { %v240_v6 = vadd.f32 1e-05, %v238_v4  ;;  %v239_v7 = vmul.f32 0.03125, %v237_v5 }
 0x41b   :  { %394 = vrsqrt.f32 %v240_v6  ;;  %v241_v8 = vadd.f32 1e-05, %v239_v7 }
 0x41d   :  { %396 = vrsqrt.f32 %v241_v8 }
 0x425   :  { %v395_v9 = vpop.eup %394 }
 0x426   :  { %v244_v11 = vmul.f32 %v395_v9, %v228_v57 }
 0x427   :  { %v397_v12 = vpop.eup %396 }
 0x428   :  { %v252_v13 = vmul.f32 %v347_v10, %v244_v11  ;;  %v245_v14 = vmul.f32 %v397_v12, %v229_v59 }
 0x42a   :  { %v253_v15 = vmul.f32 %v347_v10, %v245_v14  ;;  %v260_v16 = vadd.f32 %v348_v0, %v252_v13 }
 0x42c   :  { %v261_v17 = vadd.f32 %v348_v0, %v253_v15  ;;  %v262_v18 = vmax.f32 %v260_v16, 0.0 }
 0x42e   :  { %v263_v19 = vmax.f32 %v261_v17, 0.0 }
 0x430   :  { %v268_v20 = vpack.c.bf16 %v263_v19, %v262_v18 }
 0x432   :  { %380 = vmatmul.mubr.msk.bf16.vlgmr.msra.gmra.mrb[4].mxu0 %vm104_vm2, %v268_v20 }
 0x505   :  { %v325_v22 = vpop.f32.mrb[4].mxu0 }
 0x506   :  { %v326_v23 = vadd.f32 %v349_v21, %v325_v22  ;;  %v381_v24 = vpop.f32.mrb[5].mxu0 }
 0x507   :  { %v328_v25 = vpop.f32.mrb[6].mxu0 }
 0x508   :  { %332 = vst [vmem:[%s537_s11] sm:$0xff] %v326_v23  ;;  %v329_v26 = vadd.f32 %v349_v21, %v328_v25  ;;  %v382_v27 = vpop.f32.mrb[7].mxu0 }
 0x50a   :  { %333 = vst [vmem:[%s537_s11 + $0x8] sm:$0xff] %v329_v26 }

// kernel: _lambda_.6
= control target key start
LH: loop header
LB: loop body
LE: loop exit
PB: predicated region body
PF: predicated region fallthrough
CT: control target
= control target key end

     0   :  { %s1163_s25 = smov 0   ;;  %s1278_s0 = inlined_call_operand.vmem [shape: f32[2,8,32], index: 0, kind: input, shape index: {}]   ;;  %s1279_s1 = inlined_call_operand.vmem [shape: bf16[32,96], index: 1, kind: input, shape index: {}]   ;;  %s1280_s2 = inlined_call_operand.vmem [shape: f32[1,96], index: 2, kind: input, shape index: {}]   ;;  %s1281_s3 = inlined_call_operand.vmem [shape: bf16[32,32], index: 3, kind: input, shape index: {}]   ;;  %s1282_s4 = inlined_call_operand.vmem [shape: f32[1,32], index: 4, kind: input, shape index: {}]   ;;  %s1283_s5 = inlined_call_operand.vmem [shape: f32[1,32], index: 5, kind: input, shape index: {}, may-alias: {5,11}]   ;;  %s1284_s6 = inlined_call_operand.vmem [shape: f32[1,32], index: 6, kind: input, shape index: {}, may-alias: {6,12}]   ;;  %s1285_s7 = inlined_call_operand.vmem [shape: bf16[32,64], index: 7, kind: input, shape index: {}]   ;;  %s1286_s8 = inlined_call_operand.vmem [shape: f32[1,64], index: 8, kind: input, shape index: {}]   ;;  %s1287_s9 = inlined_call_operand.vmem [shape: bf16[64,32], index: 9, kind: input, shape index: {}]   ;;  %s1288_s10 = inlined_call_operand.vmem [shape: f32[1,32], index: 10, kind: input, shape index: {}]   ;;  %s1289_s11 = inlined_call_operand.vmem [shape: f32[1,32], index: 11, kind: input, shape index: {}, may-alias: {5,11}]   ;;  %s1290_s12 = inlined_call_operand.vmem [shape: f32[1,32], index: 12, kind: input, shape index: {}, may-alias: {6,12}]   ;;  %s1291_s13 = inlined_call_operand.vmem [shape: f32[2,8,32], index: 13, kind: output, shape index: {}]  }
   0x1 LB: > { %s952_s26 = sadd.s32 4294967295, %s1087_s25   ;;  %p956_p0 = scmp.ge.s32.totalorder %s1087_s25, 1  ;;  %s1087_s25 = sphi %s1163_s25, %s23_s25  }
   0x2   : > { %p386_p1 = scmp.lt.s32.totalorder %s1087_s25, 3 }
   0x4   : > { %p387_p2 = pnand %p956_p0, %p386_p1 }
   0x5   : > { %v1063_v0 = vld [vmem:[%s1279_s1] sm:$0xff] (!%p387_p2)   ;;  %v1089_v1 = vmov (!%p387_p2), 0.0   ;;  %v1064_v2 = vld [vmem:[%s1279_s1 + $0x8] sm:$0xff] (!%p387_p2)   ;;  %vm1090_vm0 = vmmov (!%p387_p2), 0   ;;  %p428_p3 = scmp.lt.s32.totalorder (!%p387_p2), %s952_s26, 1  ;;  %vm462_vm1 = vcmask (!%p387_p2), 261120  }
   0x6   : > { %390 = sbr.rel (%p387_p2) target bundleno = 2379 (0x94b), region = 72  ;;  %1003 = vmatprep.subr.bf16.mxu0 (!%p387_p2), %v1089_v1  ;;  %1011 = vmatprep.subr.bf16.mxu1 (!%p387_p2), %v1089_v1  ;;  %v959_v5 = vld [vmem:[%s1280_s2] ss:$0 sm:$0xff] (!%p387_p2)  ;;  %s1091_s20 = smov (!%p387_p2), 96   ;;  %vm557_vm2 = vcmask (!%p387_p2), 64512   ;;  %v1066_v26 = vld [vmem:[%s1281_s3 + $0x8] sm:$0xff] (!%p387_p2)  }
   0x7   : > { %1004 = vmatpush3.bf16.msra.mxu0 (!%p387_p2), %v1063_v0  ;;  %1007 = vmatprep.mubr.msk.bf16.mxu0 (!%p387_p2), %vm1090_vm0, %v1089_v1  ;;  %s1092_s21 = smov (!%p387_p2), 64   ;;  %v1065_v25 = vld [vmem:[%s1281_s3] sm:$0xff] (!%p387_p2)   ;;  %vm575_vm3 = vcmask (!%p387_p2), 1043456   ;;  %v1068_v51 = vld [vmem:[%s1285_s7 + $0x8] sm:$0xff] (!%p387_p2)   ;;  %v1071_v0 = vld [vmem:[%s1287_s9 + $0x10] sm:$0xff] (!%p387_p2)   ;;  %vm824_vm4 = vcmask (!%p387_p2), 523264  }
   0x8   : > { %1005 = vmatprep.subr.bf16.mxu0 (!%p387_p2), %v1089_v1  ;;  %1013 = vmatprep.mubr.msk.bf16.mxu1 (!%p387_p2), %vm1090_vm0, %v1089_v1  ;;  %v965_v38 = vld [vmem:[%s1282_s4] ss:$0 sm:$0xff] (!%p387_p2)  ;;  %v1070_v53 = vld [vmem:[%s1287_s9 + $0x8] sm:$0xff] (!%p387_p2)  }
   0x9   : > { %v1067_v50 = vld [vmem:[%s1285_s7] sm:$0xff] (!%p387_p2)  }
   0xa   : > { %v1069_v52 = vld [vmem:[%s1287_s9] sm:$0xff] (!%p387_p2)  }
   0xb   : > { %1006 = vmatpush3.bf16.msra.mxu0 (!%p387_p2), %v1064_v2  ;;  %v969_v58 = vld [vmem:[%s1283_s5] ss:$0 sm:$0xff] (!%p387_p2)  ;;  %v1072_v2 = vld [vmem:[%s1287_s9 + $0x18] sm:$0xff] (!%p387_p2)  }
   0xc   : > { %1017 = vmatprep.subr.bf16.mxu0 (!%p387_p2), %v1089_v1  ;;  %v970_v60 = vld [vmem:[%s1284_s6] ss:$0 sm:$0xff] (!%p387_p2) }
   0xd   : > { %s1293_s26 = smov (!%p428_p3, %s952_s26), 1 }
   0xe   : > { %s957_s14 = sshll.u32 %s1293_s26, 3 }
   0xf   : > { %s431_s17 = scalar_lea.vmem %s1278_s0, %s957_s14  ;;  %s435_s28 = scalar_lea.vmem %s1291_s13, %s957_s14 }
  0x10   : > { %v437_v3 = vld [vmem:[%s431_s17] sm:$0xff] }
  0x11   : > { %v442_v4 = vpack.c.bf16 %v437_v3, %v437_v3  ;;  %v971_v3 = vld [vmem:[%s1286_s8] ss:$0 sm:$0xff] }
  0x13   : > { %1008 = vmatmul.mubr.msk.bf16.vlgmr.msra.gmra.mrb[0].mxu0 %vm462_vm1, %v442_v4 }
  0x14   : > { %1019 = vmatprep.mubr.msk.bf16.mxu0 %vm1090_vm0, %v1089_v1 }
  0xe6   : > { %v500_v6 = vpop.f32.mrb[0].mxu0 }
  0xe7   : > { %v501_v7 = vadd.f32 %v959_v5, %v500_v6  ;;  %v1009_v8 = vpop.f32.mrb[1].mxu0 }
  0xe8   : > { %v503_v9 = vpop.f32.mrb[2].mxu0 }
  0xe9   : > { %v506_v10 = vpack.c.bf16 %v501_v7, %v501_v7  ;;  %v1010_v11 = vpop.f32.mrb[3].mxu0 }
  0xeb   : > { %508 = vrot.lane.b32.xlu0 %v506_v10, %s1091_s20 }
 0x15d   : > { %v509_v12 = vpop.permute.xlu0 %508 }
 0x15e   : > { %v514_v13 = vsel %vm462_vm1, %v509_v12, 0 }
 0x15f   : > { %1012 = vmatpush3.bf16.xpose.msra.mxu1 %v514_v13 }
 0x160   : > { %1023 = vmatprep.subr.bf16.mxu1 %v1089_v1 }
 0x166   : > { %1014 = vmatmul.mubr.msk.bf16.vlgmr.msra.gmra.mrb[0].mxu1 %vm462_vm1, %v506_v10 }
 0x167   : > { %1027 = vmatprep.mubr.msk.bf16.mxu1 %vm1090_vm0, %v1089_v1  ;;  %1024 = vmatpush3.bf16.msra.mxu1 %v1065_v25 }
 0x168   : > { %1025 = vmatprep.subr.bf16.mxu1 %v1089_v1 }
 0x16b   : > { %1026 = vmatpush3.bf16.msra.mxu1 %v1066_v26 }
 0x16c   : > { %1039 = vmatprep.subr.bf16.mxu1 %v1089_v1 }
 0x239   : > { %v550_v14 = vpop.f32.mrb[0].mxu1 }
 0x23a   : > { %v556_v15 = vmul.f32 0.17677669, %v550_v14  ;;  %v1015_v16 = vpop.f32.mrb[1].mxu1 }
 0x23b   : > { %v553_v17 = vpop.f32.mrb[2].mxu1 }
 0x23c   : > { %v1016_v18 = vpop.f32.mrb[3].mxu1  ;;  %v558_v19 = vsel %vm557_vm2, %v556_v15, -inf }
 0x23d   : > { %559 = vmax.xlane.f32.xlu0 %v558_v19 }
 0x2ca   : > { %v560_v20 = vpop.xlane.xlu0 %559 }
 0x2cb   : > { %v561_v21 = vsub.f32 %v556_v15, %v560_v20 }
 0x2cd   : > { %v562_v22 = vmul.f32 1.442695, %v561_v21 }
 0x2cf   : > { %1073 = vpow2.f32 %v562_v22 }
 0x2d9   : > { %v1074_v23 = vpop.eup %1073 }
 0x2da   : > { %v564_v24 = vsel %vm557_vm2, %v1074_v23, 0.0 }
 0x2db   : > { %565 = vadd.xlane.f32.xlu1 %v564_v24 }
 0x2ec   : > { %570 = vrot.lane.b32.xlu1 %v506_v10, %s1092_s21 }
 0x368   : > { %v566_v27 = vpop.xlane.xlu1 %565 }
 0x369   : > { %1075 = vrcp.f32 %v566_v27  ;;  %v981_v27 = vld [vmem:[%s1289_s11] ss:$0 sm:$0xff] }
 0x36c   : > { %v571_v28 = vpop.permute.xlu1 %570 }
 0x36d   : > { %v577_v29 = vsel %vm575_vm3, %v571_v28, 0 }
 0x36e   : > { %1018 = vmatpush3.bf16.msra.mxu0 %v577_v29  ;;  %v982_v29 = vld [vmem:[%s1290_s12] ss:$0 sm:$0xff] }
 0x36f   : > { %1031 = vmatprep.subr.bf16.mxu0 %v1089_v1 }
 0x373   : > { %v1076_v30 = vpop.eup %1075 }
 0x374   : > { %v568_v31 = vmul.f32 %v1076_v30, %v1074_v23 }
 0x376   : > { %v569_v32 = vpack.c.bf16 %v568_v31, %v568_v31 }
 0x378   : > { %1020 = vmatmul.mubr.msk.bf16.vlgmr.msra.gmra.mrb[4].mxu0 %vm557_vm2, %v569_v32 }
 0x379   : > { %1035 = vmatprep.mubr.msk.bf16.mxu0 %vm1090_vm0, %v1089_v1  ;;  %1032 = vmatpush3.bf16.msra.mxu0 %v1067_v50 }
 0x37a   : > { %1033 = vmatprep.subr.bf16.mxu0 %v1089_v1 }
 0x37d   : > { %1034 = vmatpush3.bf16.msra.mxu0 %v1068_v51 }
 0x44b   : > { %v613_v33 = vpop.f32.mrb[4].mxu0 }
 0x44c   : > { %v623_v34 = vpack.c.bf16 %v613_v33, %v613_v33  ;;  %v1021_v35 = vpop.f32.mrb[5].mxu0 }
 0x44d   : > { %v616_v36 = vpop.f32.mrb[6].mxu0 }
 0x44e   : > { %v1022_v37 = vpop.f32.mrb[7].mxu0  ;;  %1028 = vmatmul.mubr.msk.bf16.vlgmr.msra.gmra.mrb[4].mxu1 %vm462_vm1, %v623_v34 }
 0x44f   : > { %1047 = vmatprep.mubr.msk.bf16.mxu1 %vm1090_vm0, %v1089_v1  ;;  %1040 = vmatpush3.bf16.msra.mxu1 %v1069_v52 }
 0x450   : > { %1041 = vmatprep.subr.bf16.mxu1 %v1089_v1 }
 0x453   : > { %1042 = vmatpush3.bf16.msra.mxu1 %v1070_v53 }
 0x454   : > { %1043 = vmatprep.subr.bf16.mxu1 %v1089_v1 }
 0x457   : > { %1044 = vmatpush3.bf16.msra.mxu1 %v1071_v0 }
 0x458   : > { %1045 = vmatprep.subr.bf16.mxu1 %v1089_v1  ;;  %v975_v1 = vld [vmem:[%s1288_s10] ss:$0 sm:$0xff] }
 0x45b   : > { %1046 = vmatpush3.bf16.msra.mxu1 %v1072_v2 }
 0x521   : > { %v680_v39 = vpop.f32.mrb[4].mxu1 }
 0x522   : > { %v681_v40 = vadd.f32 %v965_v38, %v680_v39  ;;  %v1029_v41 = vpop.f32.mrb[5].mxu1 }
 0x523   : > { %v683_v42 = vpop.f32.mrb[6].mxu1 }
 0x524   : > { %v1030_v43 = vpop.f32.mrb[7].mxu1  ;;  %v688_v44 = vsel %vm462_vm1, %v681_v40, 0.0 }
 0x525   : > { %689 = vadd.xlane.f32.xlu1 %v688_v44 }
 0x5b2   : > { %v690_v45 = vpop.xlane.xlu1 %689 }
 0x5b3   : > { %v692_v46 = vmul.f32 0.03125, %v690_v45 }
 0x5b5   : > { %v693_v47 = vsub.f32 %v681_v40, %v692_v46 }
 0x5b7   : > { %v694_v48 = vmul.f32 %v693_v47, %v693_v47 }
 0x5b9   : > { %v695_v49 = vsel %vm462_vm1, %v694_v48, 0.0 }
 0x5ba   : > { %696 = vadd.xlane.f32.xlu0 %v695_v49 }
 0x647   : > { %v697_v54 = vpop.xlane.xlu0 %696 }
 0x648   : > { %v698_v55 = vmul.f32 0.03125, %v697_v54 }
 0x64a   : > { %v699_v56 = vadd.f32 1e-05, %v698_v55 }
 0x64c   : > { %1077 = vrsqrt.f32 %v699_v56 }
 0x656   : > { %v1078_v57 = vpop.eup %1077 }
 0x657   : > { %v701_v59 = vmul.f32 %v1078_v57, %v693_v47 }
 0x659   : > { %v708_v61 = vmul.f32 %v969_v58, %v701_v59 }
 0x65b   : > { %v715_v62 = vadd.f32 %v970_v60, %v708_v61 }
 0x65d   : > { %v720_v63 = vpack.c.bf16 %v715_v62, %v715_v62 }
 0x65f   : > { %1036 = vmatmul.mubr.msk.bf16.vlgmr.msra.gmra.mrb[8].mxu0 %vm462_vm1, %v720_v63 }
 0x732   : > { %v777_v4 = vpop.f32.mrb[8].mxu0 }
 0x733   : > { %v778_v5 = vadd.f32 %v971_v3, %v777_v4  ;;  %v1037_v6 = vpop.f32.mrb[9].mxu0 }
 0x734   : > { %v780_v7 = vpop.f32.mrb[10].mxu0 }
 0x735   : > { %v783_v8 = vmax.f32 %v778_v5, 0.0  ;;  %v1038_v9 = vpop.f32.mrb[11].mxu0 }
 0x737   : > { %v792_v10 = vpack.c.bf16 %v783_v8, %v783_v8 }
 0x739   : > { %1048 = vmatmul.mubr.msk.bf16.vlgmr.msra.gmra.mrb[8].mxu1 %vm824_vm4, %v792_v10 }
 0x80c   : > { %v862_v11 = vpop.f32.mrb[8].mxu1 }
 0x80d   : > { %v863_v12 = vadd.f32 %v975_v1, %v862_v11  ;;  %v1049_v13 = vpop.f32.mrb[9].mxu1 }
 0x80e   : > { %v865_v14 = vpop.f32.mrb[10].mxu1 }
 0x80f   : > { %v1050_v15 = vpop.f32.mrb[11].mxu1  ;;  %v868_v16 = vadd.f32 %v863_v12, %v715_v62 }
 0x811   : > { %v871_v17 = vsel %vm462_vm1, %v868_v16, 0.0 }
 0x812   : > { %872 = vadd.xlane.f32.xlu0 %v871_v17 }
 0x89f   : > { %v873_v18 = vpop.xlane.xlu0 %872 }
 0x8a0   : > { %v874_v19 = vmul.f32 0.03125, %v873_v18 }
 0x8a2   : > { %v875_v20 = vsub.f32 %v868_v16, %v874_v19 }
 0x8a4   : > { %v876_v21 = vmul.f32 %v875_v20, %v875_v20 }
 0x8a6   : > { %v877_v22 = vsel %vm462_vm1, %v876_v21, 0.0 }
 0x8a7   : > { %878 = vadd.xlane.f32.xlu0 %v877_v22 }
 0x934   : > { %v879_v23 = vpop.xlane.xlu0 %878 }
 0x935   : > { %v880_v24 = vmul.f32 0.03125, %v879_v23 }
 0x937   : > { %v881_v25 = vadd.f32 1e-05, %v880_v24 }
 0x939   : > { %1079 = vrsqrt.f32 %v881_v25 }
 0x943   : > { %v1080_v26 = vpop.eup %1079 }
 0x944   : > { %v883_v28 = vmul.f32 %v1080_v26, %v875_v20 }
 0x946   : > { %v890_v30 = vmul.f32 %v981_v27, %v883_v28 }
 0x948   : > { %v897_v31 = vadd.f32 %v982_v29, %v890_v30 }
 0x94a   : > { %898 = vst.msk [vmem:[%s435_s28] sm:$0xff] %vm462_vm1, %v897_v31 }
 0x94b PF: > { %s23_s25 = sadd.s32 1, %s1087_s25  }
 0x94c   : > { %p20_p4 = scmp.ge.s32.totalorder %s23_s25, 4  }
 0x94e   :  { %22 = sbr.rel (!%p20_p4) target bundleno = 1 (0x1), region = 102 }

// kernel: _lambda_.7
= control target key start
LH: loop header
LB: loop body
LE: loop exit
PB: predicated region body
PF: predicated region fallthrough
CT: control target
= control target key end

     0   :  { %14 = vsyncpa [#allocation4], 0  ;;  %s854_s30 = smov 0   ;;  %s944_s0 = inlined_call_operand.vmem [shape: f32[2,256], index: 0, kind: input, shape index: {}]   ;;  %s945_s1 = inlined_call_operand.vmem [shape: bf16[256,32], index: 1, kind: input, shape index: {}]   ;;  %s946_s2 = inlined_call_operand.vmem [shape: f32[1,32], index: 2, kind: input, shape index: {}]   ;;  %s947_s3 = inlined_call_operand.vmem [shape: f32[1,32], index: 3, kind: input, shape index: {}, may-alias: {3,7}]   ;;  %s948_s4 = inlined_call_operand.vmem [shape: f32[1,32], index: 4, kind: input, shape index: {}, may-alias: {4,8}]   ;;  %s949_s5 = inlined_call_operand.vmem [shape: bf16[32,32], index: 5, kind: input, shape index: {}]   ;;  %s950_s6 = inlined_call_operand.vmem [shape: f32[1,32], index: 6, kind: input, shape index: {}]   ;;  %s951_s7 = inlined_call_operand.vmem [shape: f32[1,32], index: 7, kind: input, shape index: {}, may-alias: {3,7}]   ;;  %s952_s8 = inlined_call_operand.vmem [shape: f32[1,32], index: 8, kind: input, shape index: {}, may-alias: {4,8}]   ;;  %s953_s9 = inlined_call_operand.hbm [shape: f32[2,32], index: 9, kind: output, shape index: {}]  }
   0x1 LB: > { %s860_s10 = sadd.s32 4294967295, %s796_s30   ;;  %p659_p0 = scmp.ge.s32.totalorder %s796_s30, 1  ;;  %s796_s30 = sphi %s854_s30, %s20_s30  }
   0x2   : > { %p293_p1 = scmp.lt.s32.totalorder %s796_s30, 3 }
   0x4   : > { %p294_p2 = pnand %p659_p0, %p293_p1 }
   0x5   : > { %p328_p3 = scmp.lt.s32.totalorder (!%p294_p2), %s860_s10, 1  ;;  %s661_s11 = sshll.u32 (!%p294_p2), %s860_s10, 4 }
   0x6   : > { %297 = sbr.rel (%p294_p2) target bundleno = 1150 (0x47e), region = 56  ;;  %p333_p4 = scmp.lt.s32.totalorder (!%p294_p2), %s661_s11, 31 }
   0x7   : > { %p663_p5 = scmp.ne.s32.totalorder (!%p294_p2), %s860_s10, 0 }
   0xd   : > { %s329_s12 = scalar_select %p328_p3, %s860_s10, 1 }
   0xe   : > { %s955_s11 = smov (!%p333_p4, %s661_s11), 31  ;;  %342 = sbr.rel (%p663_p5) target bundleno = 21 (0x15), region = 60 }
   0xf   : > { %s660_s13 = sshll.u32 %s329_s12, 1  ;;  %s662_s17 = sshll.u32 %s955_s11, 2  ;;  %vm343_vm0 = vcmask (!%p663_p5), 254976   ;;  %v798_v0 = vmov (!%p663_p5), 0.0  }
  0x10   : > { %s870_s16 = scalar_lea.vmem %s944_s0, %s660_s13  ;;  %s875_s20 = scalar_lea.vmem %s945_s1, %s662_s17  ;;  %344 = vst.msk [vmem:[#allocation2] sm:$0x3] (!%p663_p5), %vm343_vm0, %v798_v0 }
  0x15 PF: > { %v746_v1 = vld [vmem:[%s875_s20] sm:$0xff]   ;;  %v799_v2 = vmov 0.0   ;;  %v747_v3 = vld [vmem:[%s875_s20 + $0x8] sm:$0xff]   ;;  %vm800_vm1 = vmmov 0   ;;  %v748_v4 = vld [vmem:[%s875_s20 + $0x10] sm:$0xff]   ;;  %vm453_vm2 = vcmask 254976  }
  0x16   : > { %698 = vmatprep.subr.bf16.mxu0 %v799_v2  ;;  %714 = vmatprep.mubr.msk.bf16.mxu0 %vm800_vm1, %v799_v2  ;;  %v749_v5 = vld [vmem:[%s875_s20 + $0x18] sm:$0xff]   ;;  %v750_v6 = vld [vmem:[%s875_s20 + $0x20] sm:$0xff]   ;;  %v751_v7 = vld [vmem:[%s875_s20 + $0x28] sm:$0xff]   ;;  %p672_p6 = scmp.ne.s32.totalorder %s860_s10, 1 }
  0x17   : > { %699 = vmatpush3.bf16.msra.mxu0 %v746_v1  ;;  %v752_v8 = vld [vmem:[%s875_s20 + $0x30] sm:$0xff]   ;;  %v753_v9 = vld [vmem:[%s875_s20 + $0x38] sm:$0xff]   ;;  %v346_v10 = vld [vmem:[%s870_s16] sm:$0x3]  ;;  %v801_v28 = vmov (!%p672_p6), 0.0   ;;  %vm802_vm3 = vmmov (!%p672_p6), 0  }
  0x18   : > { %700 = vmatprep.subr.bf16.mxu0 %v799_v2  ;;  %v363_v11 = vpack.c.bf16 %v346_v10, %v346_v10  ;;  %v345_v12 = vld [vmem:[#allocation2] sm:$0x3]  ;;  %v755_v29 = vld [vmem:[%s949_s5 + $0x8] sm:$0xff] (!%p672_p6)   ;;  %vm523_vm4 = vcmask (!%p672_p6), 261120  }
  0x19   : > { %v673_v19 = vld [vmem:[%s946_s2] ss:$0 sm:$0xff] (!%p672_p6) }
  0x1a   : > { %v754_v27 = vld [vmem:[%s949_s5] sm:$0xff] (!%p672_p6)  }
  0x1b   : > { %701 = vmatpush3.bf16.msra.mxu0 %v747_v3  ;;  %v674_v34 = vld [vmem:[%s947_s3] ss:$0 sm:$0xff] (!%p672_p6) }
  0x1c   : > { %702 = vmatprep.subr.bf16.mxu0 %v799_v2  ;;  %v675_v36 = vld [vmem:[%s948_s4] ss:$0 sm:$0xff] (!%p672_p6) }
  0x1d   : > { %v676_v41 = vld [vmem:[%s950_s6] ss:$0 sm:$0xff] (!%p672_p6) }
  0x1e   : > { %v680_v57 = vld [vmem:[%s951_s7] ss:$0 sm:$0xff] (!%p672_p6) }
  0x1f   : > { %703 = vmatpush3.bf16.msra.mxu0 %v748_v4  ;;  %v681_v59 = vld [vmem:[%s952_s8] ss:$0 sm:$0xff] (!%p672_p6) }
  0x20   : > { %704 = vmatprep.subr.bf16.mxu0 %v799_v2 }
  0x23   : > { %705 = vmatpush3.bf16.msra.mxu0 %v749_v5 }
  0x24   : > { %706 = vmatprep.subr.bf16.mxu0 %v799_v2 }
  0x27   : > { %707 = vmatpush3.bf16.msra.mxu0 %v750_v6 }
  0x28   : > { %708 = vmatprep.subr.bf16.mxu0 %v799_v2 }
  0x2b   : > { %709 = vmatpush3.bf16.msra.mxu0 %v751_v7 }
  0x2c   : > { %710 = vmatprep.subr.bf16.mxu0 %v799_v2 }
  0x2f   : > { %711 = vmatpush3.bf16.msra.mxu0 %v752_v8 }
  0x30   : > { %712 = vmatprep.subr.bf16.mxu0 %v799_v2 }
  0x33   : > { %713 = vmatpush3.bf16.msra.mxu0 %v753_v9 }
  0x34   : > { %718 = vmatprep.subr.bf16.mxu0 (!%p672_p6), %v801_v28 }
  0x36   : > { %715 = vmatmul.mubr.bf16.vlgmr.msra.gmra.mrb[0].mxu0 %v363_v11 }
  0x37   : > { %722 = vmatprep.mubr.msk.bf16.mxu0 (!%p672_p6), %vm802_vm3, %v801_v28  ;;  %719 = vmatpush3.bf16.msra.mxu0 (!%p672_p6), %v754_v27 }
  0x38   : > { %720 = vmatprep.subr.bf16.mxu0 (!%p672_p6), %v801_v28 }
  0x3b   : > { %721 = vmatpush3.bf16.msra.mxu0 (!%p672_p6), %v755_v29 }
 0x106   : > { %458 = sbr.rel (%p672_p6) target bundleno = 1125 (0x465), region = 64 }
 0x109   : > { %v446_v13 = vpop.f32.mrb[0].mxu0 }
 0x10a   : > { %v452_v14 = vadd.f32 %v446_v13, %v345_v12  ;;  %v716_v15 = vpop.f32.mrb[1].mxu0 }
 0x10b   : > { %v449_v16 = vpop.f32.mrb[2].mxu0 }
 0x10c   : > { %454 = vst.msk [vmem:[#allocation2] sm:$0x3] %vm453_vm2, %v452_v14  ;;  %v717_v17 = vpop.f32.mrb[3].mxu0 }
 0x113   : > { %v459_v18 = vld [vmem:[#allocation2] sm:$0x3] }
 0x114   : > { %v467_v20 = vadd.f32 %v673_v19, %v459_v18 }
 0x116   : > { %v470_v21 = vsel %vm453_vm2, %v467_v20, 0.0 }
 0x117   : > { %471 = vadd.xlane.f32.xlu0 %v470_v21 }
 0x1a4   : > { %v472_v22 = vpop.xlane.xlu0 %471 }
 0x1a5   : > { %v474_v23 = vmul.f32 0.03125, %v472_v22 }
 0x1a7   : > { %v475_v24 = vsub.f32 %v467_v20, %v474_v23 }
 0x1a9   : > { %v476_v25 = vmul.f32 %v475_v24, %v475_v24 }
 0x1ab   : > { %v477_v26 = vsel %vm453_vm2, %v476_v25, 0.0 }
 0x1ac   : > { %478 = vadd.xlane.f32.xlu0 %v477_v26 }
 0x239   : > { %v479_v30 = vpop.xlane.xlu0 %478 }
 0x23a   : > { %v480_v31 = vmul.f32 0.03125, %v479_v30 }
 0x23c   : > { %v481_v32 = vadd.f32 1e-05, %v480_v31 }
 0x23e   : > { %756 = vrsqrt.f32 %v481_v32 }
 0x248   : > { %v757_v33 = vpop.eup %756 }
 0x249   : > { %v483_v35 = vmul.f32 %v757_v33, %v475_v24 }
 0x24b   : > { %v490_v37 = vmul.f32 %v674_v34, %v483_v35 }
 0x24d   : > { %v497_v38 = vadd.f32 %v675_v36, %v490_v37 }
 0x24f   : > { %v498_v39 = vmax.f32 %v497_v38, 0.0 }
 0x251   : > { %v503_v40 = vpack.c.bf16 %v498_v39, %v498_v39 }
 0x253   : > { %723 = vmatmul.mubr.msk.bf16.vlgmr.msra.gmra.mrb[0].mxu0 %vm523_vm4, %v503_v40 }
 0x326   : > { %v561_v42 = vpop.f32.mrb[0].mxu0 }
 0x327   : > { %v562_v43 = vadd.f32 %v676_v41, %v561_v42  ;;  %v724_v44 = vpop.f32.mrb[1].mxu0 }
 0x328   : > { %v564_v45 = vpop.f32.mrb[2].mxu0 }
 0x329   : > { %v725_v46 = vpop.f32.mrb[3].mxu0  ;;  %v569_v47 = vsel %vm453_vm2, %v562_v43, 0.0 }
 0x32a   : > { %570 = vadd.xlane.f32.xlu1 %v569_v47 }
 0x3b7   : > { %v571_v48 = vpop.xlane.xlu1 %570 }
 0x3b8   : > { %v572_v49 = vmul.f32 0.03125, %v571_v48 }
 0x3ba   : > { %v573_v50 = vsub.f32 %v562_v43, %v572_v49 }
 0x3bc   : > { %v574_v51 = vmul.f32 %v573_v50, %v573_v50 }
 0x3be   : > { %v575_v52 = vsel %vm453_vm2, %v574_v51, 0.0 }
 0x3bf   : > { %576 = vadd.xlane.f32.xlu1 %v575_v52 }
 0x44c   : > { %v577_v53 = vpop.xlane.xlu1 %576 }
 0x44d   : > { %v578_v54 = vmul.f32 0.03125, %v577_v53 }
 0x44f   : > { %v579_v55 = vadd.f32 1e-05, %v578_v54 }
 0x451   : > { %758 = vrsqrt.f32 %v579_v55 }
 0x45b   : > { %v759_v56 = vpop.eup %758 }
 0x45c   : > { %v581_v58 = vmul.f32 %v759_v56, %v573_v50 }
 0x45e   : > { %v588_v60 = vmul.f32 %v680_v57, %v581_v58 }
 0x460   : > { %v595_v61 = vadd.f32 %v681_v59, %v588_v60 }
 0x462   : > { %v596_v62 = vmax.f32 %v595_v61, 0.0 }
 0x464   : > { %597 = vst.msk [vmem:[#allocation3] sm:$0x3] %vm453_vm2, %v596_v62 }
 0x465 PF: > { %p730_p7 = scmp.eq.s32.totalorder %s860_s10, 1  ;;  %s803_s18 = smov [#allocation3]  }
 0x466   : > { %s605_s19 = sshll.u32 %s803_s18, 4  ;;  %s606_s19 = int_to_ptr.vmem [resolvable:$true] %s605_s19 }
 0x467   : > { %s760_s20 = scalar_lea.vmem %s606_s19, 32  ;;  %p767_p11 = scmp.lt.s32.totalorder %s606_s19, %s606_s19 }
 0x468   : > { %p761_p8 = scmp.ne.s32.totalorder %s606_s19, %s760_s20  ;;  %p768_p12 = scmp.lt.s32.totalorder %s760_s20, %s760_s20 }
 0x46a   : > { %p762_p9 = pnand %p761_p8, %p730_p7  ;;  %p769_p13 = por %p768_p12, %p767_p11 }
 0x46c   : > { %p763_p10 = pneg %p762_p9 }
 0x46e   : > { %p770_p0 = pnand %p769_p13, %p763_p10 }
 0x470   : > { %773 = shalt.err (!%p770_p0)
}
 0x471   : > { %s774_s23 = scalar_lea.hbm %s953_s9, 32 }
 0x472   : > { %p775_p1 = scmp.ne.s32.totalorder %s953_s9, %s774_s23  ;;  %p780_p4 = scmp.lt.u32.totalorder %s774_s23, %s953_s9 }
 0x474   : > { %p776_p2 = pnand %p775_p1, %p730_p7 }
 0x476   : > { %p777_p3 = pneg %p776_p2 }
 0x478   : > { %p782_p5 = pnand %p780_p4, %p777_p3 }
 0x47a   : > { %785 = shalt.err (!%p782_p5)
}
 0x47b   : > { %727 = dma.vmem_to_hbm [thread:$0]  (%p730_p7), %s606_s19, 32, %s953_s9, [#allocation4]  }
 0x47c   : > { %791 = dma.done.wait (%p730_p7), [#allocation4], 32  }
 0x47d   : > { %793 = vsyncadd (%p730_p7), [#allocation4], 4294967264 }
 0x47e PF: > { %s20_s30 = sadd.s32 1, %s796_s30  }
 0x47f   : > { %p17_p6 = scmp.ge.s32.totalorder %s20_s30, 4  }
 0x481   :  { %19 = sbr.rel (!%p17_p6) target bundleno = 1 (0x1), region = 94 }
 0x488   :  { %618 = vsyncpa [#allocation4], 1 }
 0x489   :  { %620 = vsyncpa [#allocation4 + $0x1], 1 }

</bundles_post_ra>
